<compile_context>
chip_gen: v7x
topology: tpu7x:2x2x1
jax: 0.10.0
libtpu: 0.0.40
codegen_flags: <defaults>
</compile_context>

<pallas_src>
import functools

import jax
import jax.numpy as jnp
import numpy as np
from jax.experimental import pallas as pl
from jax.experimental.pallas import tpu as pltpu

EPS = 1e-5


# ----------------------------- in-kernel helpers ----------------------------
def _per_channel_mean(v, pool, inv_count):
    """Per-channel mean over a lane-packed (R, W*C) slab, already broadcast
    back to every lane of that channel.

    v    : (R, L) f32, lane index = w*C + c
    pool : (L, L) f32 constant, pool[i, j] = 1 iff (i % C) == (j % C)
    Returns (1, L) f32 where lane j holds mean over channel (j % C).
    """
    pooled = jnp.dot(v, pool, preferred_element_type=jnp.float32)   # (R, L)
    return jnp.sum(pooled, axis=0, keepdims=True) * inv_count


def _basic_block_kernel(x_ref, pool_ref, w1_ref, g1_ref, b1_ref,
                        w2_ref, g2_ref, b2_ref, o_ref, pad_ref, *, C):
    """Fused BasicBlock forward.

    x_ref      : (B, H, W*C)   f32 lane-packed NHWC input
    pool_ref   : (W*C, W*C)    f32 channel-pooling matrix for BN reductions
    w{1,2}_ref : (3, KP, W*C)  f32 banded conv weights, one matmul per di
    g*/b*_ref  : (1, W*C)      BN gamma/beta pre-tiled per lane
    o_ref      : (B, H, W*C)   f32 lane-packed NHWC output
    pad_ref    : (B, H+2, KP)  f32 scratch; rows 0 / H+1 and lanes >= W*C are
                               the zero halo (never written after the memset)
    """
    B, H, WC = x_ref.shape
    KP = pad_ref.shape[-1]
    ROWS = B * H                       # rows of the lane-packed activation
    NPIX = ROWS * (WC // C)            # B*H*W elements per BN channel
    inv_npix = 1.0 / NPIX
    f32 = jnp.float32

    # Zero the (tiny) padded scratch once; both convs only rewrite the
    # interior lanes [0, W*C) of rows [1, H], so the halo stays zero.
    pad_ref[...] = jnp.zeros(pad_ref.shape, pad_ref.dtype)

    pool = pool_ref[...]

    def conv3x3_bn(act_bhw, w_ref, g_ref, b_ref):
        # act_bhw: (B, H, W*C) f32.  Returns (ROWS, W*C) f32 = bn(conv(act)).
        pad_ref[:, 1:H + 1, 0:WC] = act_bhw          # lane-aligned interior
        # 3x3 "same" conv == 3 MXU matmuls (one per height tap di); the
        # width taps + Cin are folded into the K axis of the banded weights.
        y = jnp.zeros((ROWS, WC), f32)
        for di in range(3):
            lhs = pad_ref[:, di:di + H, :].reshape(ROWS, KP)
            y = y + jnp.dot(lhs, w_ref[di], preferred_element_type=f32)
        # Training-mode BatchNorm, two-pass statistics, biased variance.
        mean = _per_channel_mean(y, pool, inv_npix)
        cent = y - mean
        var = _per_channel_mean(cent * cent, pool, inv_npix)
        inv = jax.lax.rsqrt(var + EPS)
        return cent * inv * g_ref[...] + b_ref[...]

    x = x_ref[...].astype(f32)                                    # (B, H, WC)
    h = jnp.maximum(conv3x3_bn(x, w1_ref, g1_ref, b1_ref), 0.0)   # stays VMEM
    out = conv3x3_bn(h.reshape(B, H, WC), w2_ref, g2_ref, b2_ref)
    out = out + x.reshape(ROWS, WC)                               # residual
    out = jnp.maximum(out, 0.0)
    o_ref[...] = out.reshape(B, H, WC).astype(o_ref.dtype)


# --------------------------- parameter preparation ---------------------------
def _band_conv_weights(w_oihw, W, k_pad):
    """Fold a 3x3 conv weight (OIHW) into 3 banded matmul operands.

    band[di] has shape (k_pad, W*Cout) so that
        conv_out[b, h, wo*Cout + co] = sum_di  pad_row(b, h + di) @ band[di]
    where the padded row lanes are laid out as:
        lane  p*Cin + ci         for interior width positions p in [0, W)
        lane  W*Cin + ci         for the right zero-halo column  (p == W)
        lane (W+1)*Cin + ci      for the left  zero-halo column  (p == -1)
        lanes >= (W+2)*Cin       unused (zero)
    """
    w = np.asarray(w_oihw, np.float32)
    Cout, Cin, KH, KW = w.shape
    assert KH == 3 and KW == 3, "only 3x3 convs are supported"
    band = np.zeros((KH, k_pad, W * Cout), np.float32)

    def lane_of(p):                       # padded width position -> lane base
        if 0 <= p < W:
            return p * Cin
        if p == W:                        # right zero-halo column
            return W * Cin
        return (W + 1) * Cin              # p == -1, left zero-halo column

    for di in range(KH):
        for dj in range(KW):
            tap = w[:, :, di, dj].T       # (Cin, Cout)
            for wo in range(W):
                lb = lane_of(wo + dj - 1)
                band[di, lb:lb + Cin, wo * Cout:(wo + 1) * Cout] = tap
    return jnp.asarray(band)


def prepare_params(w1_oihw, g1, b1, w2_oihw, g2, b2, *, width):
    """One-time host-side folding (hoisted out of the per-forward hot path)."""
    C = int(w1_oihw.shape[0])
    W = int(width)
    WC = W * C
    k_pad = pl.cdiv((W + 2) * C, 128) * 128   # round K up to a full lane tile

    def tile(v):
        return jnp.tile(jnp.asarray(v, jnp.float32), W).reshape(1, WC)

    idx = np.arange(WC)
    pool = (idx[:, None] % C == idx[None, :] % C).astype(np.float32)

    return {
        "w1": _band_conv_weights(w1_oihw, W, k_pad),
        "w2": _band_conv_weights(w2_oihw, W, k_pad),
        "g1": tile(g1), "b1": tile(b1),
        "g2": tile(g2), "b2": tile(b2),
        "pool": jnp.asarray(pool),
    }


def _vmem_limit_bytes():
    # Derive per-generation instead of hard-coding; fall back safely.
    try:
        cap = pltpu.get_tpu_info().vmem_capacity_bytes
        return max(32 * 1024 * 1024, min(int(cap * 3) // 4, 96 * 1024 * 1024))
    except Exception:
        return 32 * 1024 * 1024


# ---------------------------------- forward ----------------------------------
def basic_block_apply(x_nchw, params):
    """BasicBlock forward (stride=1, downsample=None), NCHW in / NCHW out."""
    B, C, H, W = x_nchw.shape
    WC = W * C
    KP = params["w1"].shape[1]
    # Requirements of the lane-packed layout used by this kernel.
    assert WC % 128 == 0, "W*C must be a multiple of 128 (lane-dense layout)"
    assert params["g1"].shape == (1, WC)

    # NCHW -> lane-packed (B, H, W*C).  The module contract is NCHW, so we pay
    # one tiny layout pass each way; a fully-NHWC pipeline would drop these.
    x_packed = jnp.transpose(x_nchw, (0, 2, 3, 1)).reshape(B, H, WC)
    x_packed = x_packed.astype(jnp.float32)

    kernel = functools.partial(_basic_block_kernel, C=C)

    def full(shape):
        return pl.BlockSpec(shape, lambda i, _s=shape: (0,) * len(_s))

    out_packed = pl.pallas_call(
        kernel,
        out_shape=jax.ShapeDtypeStruct((B, H, WC), jnp.float32),
        grid=(1,),
        in_specs=[full((B, H, WC)),
                  full((WC, WC)),
                  full((3, KP, WC)), full((1, WC)), full((1, WC)),
                  full((3, KP, WC)), full((1, WC)), full((1, WC))],
        out_specs=full((B, H, WC)),
        scratch_shapes=[pltpu.VMEM((B, H + 2, KP), jnp.float32)],
        compiler_params=pltpu.CompilerParams(
            dimension_semantics=("arbitrary",),
            vmem_limit_bytes=_vmem_limit_bytes(),
        ),
    )(x_packed, params["pool"],
      params["w1"], params["g1"], params["b1"],
      params["w2"], params["g2"], params["b2"])

    out = out_packed.reshape(B, H, W, C)
    return jnp.transpose(out, (0, 3, 1, 2)).astype(x_nchw.dtype)


# ---------------- pure-JAX f32 reference (for correctness check) -------------
def _ref_basic_block(x, w1, g1, b1, w2, g2, b2):
    def conv(a, w):
        return jax.lax.conv_general_dilated(
            a, w, window_strides=(1, 1), padding=[(1, 1), (1, 1)],
            dimension_numbers=("NCHW", "OIHW", "NCHW"),
            precision=jax.lax.Precision.HIGHEST)

    def bn(a, g, b):
        mean = a.mean(axis=(0, 2, 3), keepdims=True)
        var = ((a - mean) ** 2).mean(axis=(0, 2, 3), keepdims=True)
        return ((a - mean) * jax.lax.rsqrt(var + EPS)
                * g.reshape(1, -1, 1, 1) + b.reshape(1, -1, 1, 1))

    out = jnp.maximum(bn(conv(x, w1), g1, b1), 0.0)
    out = bn(conv(out, w2), g2, b2) + x
    return jnp.maximum(out, 0.0)


if __name__ == "__main__":
    B, C, H, W = 2, 8, 16, 16   # inplanes == planes == 8, stride == 1

    key = jax.random.PRNGKey(0)
    kx, k1, k2, kg1, kb1, kg2, kb2 = jax.random.split(key, 7)

    x = jax.random.normal(kx, (B, C, H, W), jnp.float32)
    w1 = 0.1 * jax.random.normal(k1, (C, C, 3, 3), jnp.float32)
    w2 = 0.1 * jax.random.normal(k2, (C, C, 3, 3), jnp.float32)
    gamma1 = 1.0 + 0.1 * jax.random.normal(kg1, (C,), jnp.float32)
    beta1 = 0.1 * jax.random.normal(kb1, (C,), jnp.float32)
    gamma2 = 1.0 + 0.1 * jax.random.normal(kg2, (C,), jnp.float32)
    beta2 = 0.1 * jax.random.normal(kb2, (C,), jnp.float32)

    # One-time weight folding / BN-param tiling, outside the hot path.
    params = prepare_params(w1, gamma1, beta1, w2, gamma2, beta2, width=W)

    fwd = jax.jit(basic_block_apply)
    out = jax.block_until_ready(fwd(x, params))

    ref = _ref_basic_block(x, w1, gamma1, beta1, w2, gamma2, beta2)
    assert out.shape == (B, C, H, W)
    # f32 storage + f32 BN throughout; only the MXU multiplies round to the
    # TPU's default matmul precision -> much tighter parity than the previous
    # bf16-staged version (measured max-abs error well below this bound).
    err = float(jnp.max(jnp.abs(out - ref)))
    assert jnp.allclose(out, ref, rtol=2e-2, atol=2e-2), err

    print("KERNEL_OK")
</pallas_src>

<mosaic_0001>
module attributes {stable_mosaic.version = 11 : i64} {
  func.func @_basic_block_kernel(%arg0: i32, %arg1: memref<2x16x128xf32, #tpu.memory_space<vmem>>, %arg2: memref<128x128xf32, #tpu.memory_space<vmem>>, %arg3: memref<3x256x128xf32, #tpu.memory_space<vmem>>, %arg4: memref<1x128xf32, #tpu.memory_space<vmem>>, %arg5: memref<1x128xf32, #tpu.memory_space<vmem>>, %arg6: memref<3x256x128xf32, #tpu.memory_space<vmem>>, %arg7: memref<1x128xf32, #tpu.memory_space<vmem>>, %arg8: memref<1x128xf32, #tpu.memory_space<vmem>>, %arg9: memref<2x16x128xf32, #tpu.memory_space<vmem>>, %arg10: memref<2x18x256xf32, #tpu.memory_space<vmem>>) attributes {dimension_semantics = [#tpu.dimension_semantics<arbitrary>], iteration_bounds = array<i64: 1>, scalar_prefetch = 0 : i64, scratch_operands = 1 : i64, tpu.core_type = #tpu.core_type<tc>, window_params = [{pipeline_mode = #tpu.pipeline_mode<synchronous>, transform_indices = @transform_0, window_bounds = array<i64: 2, 16, 128>}, {pipeline_mode = #tpu.pipeline_mode<synchronous>, transform_indices = @transform_1, window_bounds = array<i64: 128, 128>}, {pipeline_mode = #tpu.pipeline_mode<synchronous>, transform_indices = @transform_2, window_bounds = array<i64: 3, 256, 128>}, {pipeline_mode = #tpu.pipeline_mode<synchronous>, transform_indices = @transform_3, window_bounds = array<i64: 1, 128>}, {pipeline_mode = #tpu.pipeline_mode<synchronous>, transform_indices = @transform_4, window_bounds = array<i64: 1, 128>}, {pipeline_mode = #tpu.pipeline_mode<synchronous>, transform_indices = @transform_5, window_bounds = array<i64: 3, 256, 128>}, {pipeline_mode = #tpu.pipeline_mode<synchronous>, transform_indices = @transform_6, window_bounds = array<i64: 1, 128>}, {pipeline_mode = #tpu.pipeline_mode<synchronous>, transform_indices = @transform_7, window_bounds = array<i64: 1, 128>}, {pipeline_mode = #tpu.pipeline_mode<synchronous>, transform_indices = @transform_8, window_bounds = array<i64: 2, 16, 128>}]} {
    %cst = arith.constant 0.000000e+00 : f32
    %0 = vector.broadcast %cst : f32 to vector<2x18x256xf32>
    %c0 = arith.constant 0 : index
    %c0_0 = arith.constant 0 : index
    %c0_1 = arith.constant 0 : index
    %1 = vector.load %arg10[%c0, %c0_0, %c0_1] : memref<2x18x256xf32, #tpu.memory_space<vmem>>, vector<2x18x256xf32>
    tpu.vector_store %arg10[%c0, %c0_0, %c0_1], %0 {strides = array<i32>} : memref<2x18x256xf32, #tpu.memory_space<vmem>>, vector<2x18x256xf32>,
    %c0_2 = arith.constant 0 : index
    %c0_3 = arith.constant 0 : index
    %2 = vector.load %arg2[%c0_2, %c0_3] : memref<128x128xf32, #tpu.memory_space<vmem>>, vector<128x128xf32>
    %c0_4 = arith.constant 0 : index
    %c0_5 = arith.constant 0 : index
    %c0_6 = arith.constant 0 : index
    %3 = vector.load %arg1[%c0_4, %c0_5, %c0_6] : memref<2x16x128xf32, #tpu.memory_space<vmem>>, vector<2x16x128xf32>
    %c0_7 = arith.constant 0 : index
    %c1 = arith.constant 1 : index
    %c0_8 = arith.constant 0 : index
    %4 = vector.load %arg10[%c0_7, %c1, %c0_8] : memref<2x18x256xf32, #tpu.memory_space<vmem>>, vector<2x16x128xf32>
    tpu.vector_store %arg10[%c0_7, %c1, %c0_8], %3 {strides = array<i32>} : memref<2x18x256xf32, #tpu.memory_space<vmem>>, vector<2x16x128xf32>,
    %cst_9 = arith.constant 0.000000e+00 : f32
    %5 = vector.broadcast %cst_9 : f32 to vector<32x128xf32>
    %c0_10 = arith.constant 0 : index
    %c0_11 = arith.constant 0 : index
    %c0_12 = arith.constant 0 : index
    %6 = vector.load %arg10[%c0_10, %c0_11, %c0_12] : memref<2x18x256xf32, #tpu.memory_space<vmem>>, vector<2x16x256xf32>
    %7 = vector.shape_cast %6 : vector<2x16x256xf32> to vector<32x256xf32>
    %c0_13 = arith.constant 0 : index
    %c0_14 = arith.constant 0 : index
    %c0_15 = arith.constant 0 : index
    %8 = vector.load %arg3[%c0_13, %c0_14, %c0_15] : memref<3x256x128xf32, #tpu.memory_space<vmem>>, vector<1x256x128xf32>
    %9 = vector.shape_cast %8 : vector<1x256x128xf32> to vector<256x128xf32>
    %cst_16 = arith.constant dense<0.000000e+00> : vector<32x128xf32>
    %10 = tpu.matmul %7, %9, %cst_16 {dimension_numbers = #tpu.dot_dimension_numbers<[1], [0], [0], [1], [0, 0, 1, 1], [], []>} : vector<32x256xf32>, vector<256x128xf32>, vector<32x128xf32> -> vector<32x128xf32>
    %11 = arith.addf %5, %10 : vector<32x128xf32>
    %c0_17 = arith.constant 0 : index
    %c1_18 = arith.constant 1 : index
    %c0_19 = arith.constant 0 : index
    %12 = vector.load %arg10[%c0_17, %c1_18, %c0_19] : memref<2x18x256xf32, #tpu.memory_space<vmem>>, vector<2x16x256xf32>
    %13 = vector.shape_cast %12 : vector<2x16x256xf32> to vector<32x256xf32>
    %c1_20 = arith.constant 1 : index
    %c0_21 = arith.constant 0 : index
    %c0_22 = arith.constant 0 : index
    %14 = vector.load %arg3[%c1_20, %c0_21, %c0_22] : memref<3x256x128xf32, #tpu.memory_space<vmem>>, vector<1x256x128xf32>
    %15 = vector.shape_cast %14 : vector<1x256x128xf32> to vector<256x128xf32>
    %cst_23 = arith.constant dense<0.000000e+00> : vector<32x128xf32>
    %16 = tpu.matmul %13, %15, %cst_23 {dimension_numbers = #tpu.dot_dimension_numbers<[1], [0], [0], [1], [0, 0, 1, 1], [], []>} : vector<32x256xf32>, vector<256x128xf32>, vector<32x128xf32> -> vector<32x128xf32>
    %17 = arith.addf %11, %16 : vector<32x128xf32>
    %c0_24 = arith.constant 0 : index
    %c2 = arith.constant 2 : index
    %c0_25 = arith.constant 0 : index
    %18 = vector.load %arg10[%c0_24, %c2, %c0_25] : memref<2x18x256xf32, #tpu.memory_space<vmem>>, vector<2x16x256xf32>
    %19 = vector.shape_cast %18 : vector<2x16x256xf32> to vector<32x256xf32>
    %c2_26 = arith.constant 2 : index
    %c0_27 = arith.constant 0 : index
    %c0_28 = arith.constant 0 : index
    %20 = vector.load %arg3[%c2_26, %c0_27, %c0_28] : memref<3x256x128xf32, #tpu.memory_space<vmem>>, vector<1x256x128xf32>
    %21 = vector.shape_cast %20 : vector<1x256x128xf32> to vector<256x128xf32>
    %cst_29 = arith.constant dense<0.000000e+00> : vector<32x128xf32>
    %22 = tpu.matmul %19, %21, %cst_29 {dimension_numbers = #tpu.dot_dimension_numbers<[1], [0], [0], [1], [0, 0, 1, 1], [], []>} : vector<32x256xf32>, vector<256x128xf32>, vector<32x128xf32> -> vector<32x128xf32>
    %23 = arith.addf %17, %22 : vector<32x128xf32>
    %cst_30 = arith.constant dense<0.000000e+00> : vector<32x128xf32>
    %24 = tpu.matmul %23, %2, %cst_30 {dimension_numbers = #tpu.dot_dimension_numbers<[1], [0], [0], [1], [0, 0, 1, 1], [], []>} : vector<32x128xf32>, vector<128x128xf32>, vector<32x128xf32> -> vector<32x128xf32>
    %cst_31 = arith.constant dense<0.000000e+00> : vector<128xf32>
    %25 = vector.multi_reduction <add>, %24, %cst_31 [0] : vector<32x128xf32> to vector<128xf32>
    %26 = vector.shape_cast %25 : vector<128xf32> to vector<1x128xf32>
    %cst_32 = arith.constant 0.001953125 : f32
    %27 = vector.broadcast %cst_32 : f32 to vector<1x128xf32>
    %28 = arith.mulf %26, %27 : vector<1x128xf32>
    %29 = vector.broadcast %28 : vector<1x128xf32> to vector<32x128xf32>
    %30 = arith.subf %23, %29 : vector<32x128xf32>
    %31 = arith.mulf %30, %30 : vector<32x128xf32>
    %cst_33 = arith.constant dense<0.000000e+00> : vector<32x128xf32>
    %32 = tpu.matmul %31, %2, %cst_33 {dimension_numbers = #tpu.dot_dimension_numbers<[1], [0], [0], [1], [0, 0, 1, 1], [], []>} : vector<32x128xf32>, vector<128x128xf32>, vector<32x128xf32> -> vector<32x128xf32>
    %cst_34 = arith.constant dense<0.000000e+00> : vector<128xf32>
    %33 = vector.multi_reduction <add>, %32, %cst_34 [0] : vector<32x128xf32> to vector<128xf32>
    %34 = vector.shape_cast %33 : vector<128xf32> to vector<1x128xf32>
    %cst_35 = arith.constant 0.001953125 : f32
    %35 = vector.broadcast %cst_35 : f32 to vector<1x128xf32>
    %36 = arith.mulf %34, %35 : vector<1x128xf32>
    %cst_36 = arith.constant 9.99999974E-6 : f32
    %37 = vector.broadcast %cst_36 : f32 to vector<1x128xf32>
    %38 = arith.addf %36, %37 : vector<1x128xf32>
    %39 = math.rsqrt %38 : vector<1x128xf32>
    %40 = vector.broadcast %39 : vector<1x128xf32> to vector<32x128xf32>
    %41 = arith.mulf %30, %40 : vector<32x128xf32>
    %c0_37 = arith.constant 0 : index
    %c0_38 = arith.constant 0 : index
    %42 = vector.load %arg4[%c0_37, %c0_38] : memref<1x128xf32, #tpu.memory_space<vmem>>, vector<1x128xf32>
    %43 = vector.broadcast %42 : vector<1x128xf32> to vector<32x128xf32>
    %44 = arith.mulf %41, %43 : vector<32x128xf32>
    %c0_39 = arith.constant 0 : index
    %c0_40 = arith.constant 0 : index
    %45 = vector.load %arg5[%c0_39, %c0_40] : memref<1x128xf32, #tpu.memory_space<vmem>>, vector<1x128xf32>
    %46 = vector.broadcast %45 : vector<1x128xf32> to vector<32x128xf32>
    %47 = arith.addf %44, %46 : vector<32x128xf32>
    %cst_41 = arith.constant 0.000000e+00 : f32
    %48 = vector.broadcast %cst_41 : f32 to vector<32x128xf32>
    %49 = arith.maximumf %47, %48 : vector<32x128xf32>
    %50 = vector.shape_cast %49 : vector<32x128xf32> to vector<2x16x128xf32>
    %c0_42 = arith.constant 0 : index
    %c1_43 = arith.constant 1 : index
    %c0_44 = arith.constant 0 : index
    %51 = vector.load %arg10[%c0_42, %c1_43, %c0_44] : memref<2x18x256xf32, #tpu.memory_space<vmem>>, vector<2x16x128xf32>
    tpu.vector_store %arg10[%c0_42, %c1_43, %c0_44], %50 {strides = array<i32>} : memref<2x18x256xf32, #tpu.memory_space<vmem>>, vector<2x16x128xf32>,
    %cst_45 = arith.constant 0.000000e+00 : f32
    %52 = vector.broadcast %cst_45 : f32 to vector<32x128xf32>
    %c0_46 = arith.constant 0 : index
    %c0_47 = arith.constant 0 : index
    %c0_48 = arith.constant 0 : index
    %53 = vector.load %arg10[%c0_46, %c0_47, %c0_48] : memref<2x18x256xf32, #tpu.memory_space<vmem>>, vector<2x16x256xf32>
    %54 = vector.shape_cast %53 : vector<2x16x256xf32> to vector<32x256xf32>
    %c0_49 = arith.constant 0 : index
    %c0_50 = arith.constant 0 : index
    %c0_51 = arith.constant 0 : index
    %55 = vector.load %arg6[%c0_49, %c0_50, %c0_51] : memref<3x256x128xf32, #tpu.memory_space<vmem>>, vector<1x256x128xf32>
    %56 = vector.shape_cast %55 : vector<1x256x128xf32> to vector<256x128xf32>
    %cst_52 = arith.constant dense<0.000000e+00> : vector<32x128xf32>
    %57 = tpu.matmul %54, %56, %cst_52 {dimension_numbers = #tpu.dot_dimension_numbers<[1], [0], [0], [1], [0, 0, 1, 1], [], []>} : vector<32x256xf32>, vector<256x128xf32>, vector<32x128xf32> -> vector<32x128xf32>
    %58 = arith.addf %52, %57 : vector<32x128xf32>
    %c0_53 = arith.constant 0 : index
    %c1_54 = arith.constant 1 : index
    %c0_55 = arith.constant 0 : index
    %59 = vector.load %arg10[%c0_53, %c1_54, %c0_55] : memref<2x18x256xf32, #tpu.memory_space<vmem>>, vector<2x16x256xf32>
    %60 = vector.shape_cast %59 : vector<2x16x256xf32> to vector<32x256xf32>
    %c1_56 = arith.constant 1 : index
    %c0_57 = arith.constant 0 : index
    %c0_58 = arith.constant 0 : index
    %61 = vector.load %arg6[%c1_56, %c0_57, %c0_58] : memref<3x256x128xf32, #tpu.memory_space<vmem>>, vector<1x256x128xf32>
    %62 = vector.shape_cast %61 : vector<1x256x128xf32> to vector<256x128xf32>
    %cst_59 = arith.constant dense<0.000000e+00> : vector<32x128xf32>
    %63 = tpu.matmul %60, %62, %cst_59 {dimension_numbers = #tpu.dot_dimension_numbers<[1], [0], [0], [1], [0, 0, 1, 1], [], []>} : vector<32x256xf32>, vector<256x128xf32>, vector<32x128xf32> -> vector<32x128xf32>
    %64 = arith.addf %58, %63 : vector<32x128xf32>
    %c0_60 = arith.constant 0 : index
    %c2_61 = arith.constant 2 : index
    %c0_62 = arith.constant 0 : index
    %65 = vector.load %arg10[%c0_60, %c2_61, %c0_62] : memref<2x18x256xf32, #tpu.memory_space<vmem>>, vector<2x16x256xf32>
    %66 = vector.shape_cast %65 : vector<2x16x256xf32> to vector<32x256xf32>
    %c2_63 = arith.constant 2 : index
    %c0_64 = arith.constant 0 : index
    %c0_65 = arith.constant 0 : index
    %67 = vector.load %arg6[%c2_63, %c0_64, %c0_65] : memref<3x256x128xf32, #tpu.memory_space<vmem>>, vector<1x256x128xf32>
    %68 = vector.shape_cast %67 : vector<1x256x128xf32> to vector<256x128xf32>
    %cst_66 = arith.constant dense<0.000000e+00> : vector<32x128xf32>
    %69 = tpu.matmul %66, %68, %cst_66 {dimension_numbers = #tpu.dot_dimension_numbers<[1], [0], [0], [1], [0, 0, 1, 1], [], []>} : vector<32x256xf32>, vector<256x128xf32>, vector<32x128xf32> -> vector<32x128xf32>
    %70 = arith.addf %64, %69 : vector<32x128xf32>
    %cst_67 = arith.constant dense<0.000000e+00> : vector<32x128xf32>
    %71 = tpu.matmul %70, %2, %cst_67 {dimension_numbers = #tpu.dot_dimension_numbers<[1], [0], [0], [1], [0, 0, 1, 1], [], []>} : vector<32x128xf32>, vector<128x128xf32>, vector<32x128xf32> -> vector<32x128xf32>
    %cst_68 = arith.constant dense<0.000000e+00> : vector<128xf32>
    %72 = vector.multi_reduction <add>, %71, %cst_68 [0] : vector<32x128xf32> to vector<128xf32>
    %73 = vector.shape_cast %72 : vector<128xf32> to vector<1x128xf32>
    %cst_69 = arith.constant 0.001953125 : f32
    %74 = vector.broadcast %cst_69 : f32 to vector<1x128xf32>
    %75 = arith.mulf %73, %74 : vector<1x128xf32>
    %76 = vector.broadcast %75 : vector<1x128xf32> to vector<32x128xf32>
    %77 = arith.subf %70, %76 : vector<32x128xf32>
    %78 = arith.mulf %77, %77 : vector<32x128xf32>
    %cst_70 = arith.constant dense<0.000000e+00> : vector<32x128xf32>
    %79 = tpu.matmul %78, %2, %cst_70 {dimension_numbers = #tpu.dot_dimension_numbers<[1], [0], [0], [1], [0, 0, 1, 1], [], []>} : vector<32x128xf32>, vector<128x128xf32>, vector<32x128xf32> -> vector<32x128xf32>
    %cst_71 = arith.constant dense<0.000000e+00> : vector<128xf32>
    %80 = vector.multi_reduction <add>, %79, %cst_71 [0] : vector<32x128xf32> to vector<128xf32>
    %81 = vector.shape_cast %80 : vector<128xf32> to vector<1x128xf32>
    %cst_72 = arith.constant 0.001953125 : f32
    %82 = vector.broadcast %cst_72 : f32 to vector<1x128xf32>
    %83 = arith.mulf %81, %82 : vector<1x128xf32>
    %cst_73 = arith.constant 9.99999974E-6 : f32
    %84 = vector.broadcast %cst_73 : f32 to vector<1x128xf32>
    %85 = arith.addf %83, %84 : vector<1x128xf32>
    %86 = math.rsqrt %85 : vector<1x128xf32>
    %87 = vector.broadcast %86 : vector<1x128xf32> to vector<32x128xf32>
    %88 = arith.mulf %77, %87 : vector<32x128xf32>
    %c0_74 = arith.constant 0 : index
    %c0_75 = arith.constant 0 : index
    %89 = vector.load %arg7[%c0_74, %c0_75] : memref<1x128xf32, #tpu.memory_space<vmem>>, vector<1x128xf32>
    %90 = vector.broadcast %89 : vector<1x128xf32> to vector<32x128xf32>
    %91 = arith.mulf %88, %90 : vector<32x128xf32>
    %c0_76 = arith.constant 0 : index
    %c0_77 = arith.constant 0 : index
    %92 = vector.load %arg8[%c0_76, %c0_77] : memref<1x128xf32, #tpu.memory_space<vmem>>, vector<1x128xf32>
    %93 = vector.broadcast %92 : vector<1x128xf32> to vector<32x128xf32>
    %94 = arith.addf %91, %93 : vector<32x128xf32>
    %95 = vector.shape_cast %3 : vector<2x16x128xf32> to vector<32x128xf32>
    %96 = arith.addf %94, %95 : vector<32x128xf32>
    %cst_78 = arith.constant 0.000000e+00 : f32
    %97 = vector.broadcast %cst_78 : f32 to vector<32x128xf32>
    %98 = arith.maximumf %96, %97 : vector<32x128xf32>
    %99 = vector.shape_cast %98 : vector<32x128xf32> to vector<2x16x128xf32>
    %c0_79 = arith.constant 0 : index
    %c0_80 = arith.constant 0 : index
    %c0_81 = arith.constant 0 : index
    %100 = vector.load %arg9[%c0_79, %c0_80, %c0_81] : memref<2x16x128xf32, #tpu.memory_space<vmem>>, vector<2x16x128xf32>
    tpu.vector_store %arg9[%c0_79, %c0_80, %c0_81], %99 {strides = array<i32>} : memref<2x16x128xf32, #tpu.memory_space<vmem>>, vector<2x16x128xf32>,
    return
  }
  func.func @transform_0(%arg0: i32) -> (i32, i32, i32) {
    %c0_i32 = arith.constant 0 : i32
    %c0_i32_0 = arith.constant 0 : i32
    %c0_i32_1 = arith.constant 0 : i32
    %c0_i32_2 = arith.constant 0 : i32
    return %c0_i32, %c0_i32_0, %c0_i32_1 : i32, i32, i32
  }
  func.func @transform_1(%arg0: i32) -> (i32, i32) {
    %c0_i32 = arith.constant 0 : i32
    %c0_i32_0 = arith.constant 0 : i32
    %c0_i32_1 = arith.constant 0 : i32
    return %c0_i32, %c0_i32_0 : i32, i32
  }
  func.func @transform_2(%arg0: i32) -> (i32, i32, i32) {
    %c0_i32 = arith.constant 0 : i32
    %c0_i32_0 = arith.constant 0 : i32
    %c0_i32_1 = arith.constant 0 : i32
    %c0_i32_2 = arith.constant 0 : i32
    return %c0_i32, %c0_i32_0, %c0_i32_1 : i32, i32, i32
  }
  func.func @transform_3(%arg0: i32) -> (i32, i32) {
    %c0_i32 = arith.constant 0 : i32
    %c0_i32_0 = arith.constant 0 : i32
    %c0_i32_1 = arith.constant 0 : i32
    return %c0_i32, %c0_i32_0 : i32, i32
  }
  func.func @transform_4(%arg0: i32) -> (i32, i32) {
    %c0_i32 = arith.constant 0 : i32
    %c0_i32_0 = arith.constant 0 : i32
    %c0_i32_1 = arith.constant 0 : i32
    return %c0_i32, %c0_i32_0 : i32, i32
  }
  func.func @transform_5(%arg0: i32) -> (i32, i32, i32) {
    %c0_i32 = arith.constant 0 : i32
    %c0_i32_0 = arith.constant 0 : i32
    %c0_i32_1 = arith.constant 0 : i32
    %c0_i32_2 = arith.constant 0 : i32
    return %c0_i32, %c0_i32_0, %c0_i32_1 : i32, i32, i32
  }
  func.func @transform_6(%arg0: i32) -> (i32, i32) {
    %c0_i32 = arith.constant 0 : i32
    %c0_i32_0 = arith.constant 0 : i32
    %c0_i32_1 = arith.constant 0 : i32
    return %c0_i32, %c0_i32_0 : i32, i32
  }
  func.func @transform_7(%arg0: i32) -> (i32, i32) {
    %c0_i32 = arith.constant 0 : i32
    %c0_i32_0 = arith.constant 0 : i32
    %c0_i32_1 = arith.constant 0 : i32
    return %c0_i32, %c0_i32_0 : i32, i32
  }
  func.func @transform_8(%arg0: i32) -> (i32, i32, i32) {
    %c0_i32 = arith.constant 0 : i32
    %c0_i32_0 = arith.constant 0 : i32
    %c0_i32_1 = arith.constant 0 : i32
    %c0_i32_2 = arith.constant 0 : i32
    return %c0_i32, %c0_i32_0, %c0_i32_1 : i32, i32, i32
  }
}

</mosaic_0001>

<bundles_post_ra>
// kernel: basic_block_apply.1
= control target key start
LH: loop header
LB: loop body
LE: loop exit
PB: predicated region body
PF: predicated region fallthrough
CT: control target
= control target key end

     0   :  { %13 = vsyncpa [#allocation4], 0  ;;  %s3069_s0 = inlined_call_operand.vmem [shape: f32[2,16,128], index: 0, kind: input, shape index: {}]   ;;  %s3070_s1 = inlined_call_operand.hbm [shape: f32[128,128], index: 1, kind: input, shape index: {}]   ;;  %s3071_s2 = inlined_call_operand.vmem [shape: f32[3,256,128], index: 2, kind: input, shape index: {}]   ;;  %s3072_s3 = inlined_call_operand.vmem [shape: f32[1,128], index: 3, kind: input, shape index: {}]   ;;  %s3073_s4 = inlined_call_operand.vmem [shape: f32[1,128], index: 4, kind: input, shape index: {}]   ;;  %s3074_s5 = inlined_call_operand.hbm [shape: f32[3,256,128], index: 5, kind: input, shape index: {}]   ;;  %s3075_s6 = inlined_call_operand.vmem [shape: f32[1,128], index: 6, kind: input, shape index: {}]   ;;  %s3076_s7 = inlined_call_operand.vmem [shape: f32[1,128], index: 7, kind: input, shape index: {}]   ;;  %s3077_s8 = inlined_call_operand.vmem [shape: f32[2,16,128], index: 8, kind: output, shape index: {}]  }
   0x1   :  { %14 = vsyncpa [#allocation6], 0  ;;  %s2470_s27 = smov [#allocation3]   ;;  %s2422_s9 = scalar_lea.hbm %s3070_s1, 2048 }
   0x2   :  { %s22_s28 = sshll.u32 %s2470_s27, 4  ;;  %p2423_p0 = scmp.ne.s32.totalorder %s3070_s1, %s2422_s9  ;;  %s23_s28 = int_to_ptr.vmem [resolvable:$true] %s22_s28 }
   0x3   :  { %p2426_p1 = scmp.lt.u32.totalorder %s2422_s9, %s3070_s1 }
   0x5   :  { %p2428_p2 = pnand %p2426_p1, %p2423_p0 }
   0x7   :  { %2431 = shalt.err (!%p2428_p2)
}
   0x8   :  { %s2432_s14 = scalar_lea.vmem %s23_s28, 2048  ;;  %p2437_p4 = scmp.lt.s32.totalorder %s23_s28, %s23_s28 }
   0x9   :  { %p2433_p3 = scmp.ne.s32.totalorder %s23_s28, %s2432_s14  ;;  %p2438_p5 = scmp.lt.s32.totalorder %s2432_s14, %s2432_s14 }
   0xb   :  { %p2439_p6 = por %p2438_p5, %p2437_p4 }
   0xd   :  { %p2440_p7 = pnand %p2439_p6, %p2433_p3 }
   0xf   :  { %2443 = shalt.err (!%p2440_p7)
}
  0x10   :  { %s2471_s15 = smov 128   ;;  %s2472_s16 = smov 8  }
  0x11   :  { %28 = dma.hbm_to_vmem [thread:$0]  %s3070_s1, 2048, %s23_s28, [#allocation4], %s2471_s15, %s2471_s15, %s2472_s16  }
  0x12   :  { %s2473_s19 = smov [#allocation5]   ;;  %s2444_s23 = scalar_lea.hbm %s3074_s5, 12288 }
  0x13   :  { %s40_s20 = sshll.u32 %s2473_s19, 4  ;;  %p2445_p8 = scmp.ne.s32.totalorder %s3074_s5, %s2444_s23  ;;  %s41_s20 = int_to_ptr.vmem [resolvable:$true] %s40_s20 }
  0x14   :  { %p2448_p9 = scmp.lt.u32.totalorder %s2444_s23, %s3074_s5 }
  0x16   :  { %p2450_p10 = pnand %p2448_p9, %p2445_p8 }
  0x18   :  { %2453 = shalt.err (!%p2450_p10)
}
  0x19   :  { %s2454_s29 = scalar_lea.vmem %s41_s20, 12288  ;;  %p2459_p12 = scmp.lt.s32.totalorder %s41_s20, %s41_s20 }
  0x1a   :  { %p2455_p11 = scmp.ne.s32.totalorder %s41_s20, %s2454_s29  ;;  %p2460_p13 = scmp.lt.s32.totalorder %s2454_s29, %s2454_s29 }
  0x1c   :  { %p2461_p0 = por %p2460_p13, %p2459_p12 }
  0x1e   :  { %p2462_p1 = pnand %p2461_p0, %p2455_p11 }
  0x20   :  { %2465 = shalt.err (!%p2462_p1)
}
  0x21   :  { %46 = dma.hbm_to_vmem [thread:$0]  %s3074_s5, 12288, %s41_s20, [#allocation6], %s2471_s15, %s2471_s15, %s2472_s16  }
  0x22   :  { %2466 = dma.done.wait [#allocation4], 2048  }
  0x23   :  { %2467 = vsyncadd [#allocation4], 4294965248 }
  0x24   :  { %2468 = dma.done.wait [#allocation6], 12288  }
  0x25   :  { %2469 = vsyncadd [#allocation6], 4294955008  ;;  %v2474_v0 = vmov 0.0   ;;  %v1540_v1 = vld [vmem:[%s3071_s2 + $0x180] sm:$0xff]  ;;  %v1541_v2 = vld [vmem:[%s3071_s2 + $0x188] sm:$0xff]  ;;  %vm172_vm0 = vcmask 1046528  }
  0x26   :  { %58 = vst [vmem:[#allocation2 + $0x8] sm:$0xff] %v2474_v0  ;;  %57 = vst [vmem:[#allocation2] sm:$0xff] %v2474_v0  ;;  %383 = vmatprep.mubr.f32.mxu1 %v2474_v0  ;;  %v136_v3 = vld [vmem:[%s3071_s2 + $0x80] sm:$0xff]  ;;  %v2088_v4 = vpack.c.bf16 %v1541_v2, %v1540_v1  ;;  %v137_v5 = vld [vmem:[%s3071_s2 + $0x88] sm:$0xff]  ;;  %vm93_vm1 = vcmask 1040384   ;;  %vm420_vm2 = vcmask 1045504  }
  0x27   :  { %61 = vst [vmem:[#allocation2 + $0x20] sm:$0x3] %v2474_v0  ;;  %62 = vst [vmem:[#allocation2 + $0x28] sm:$0x3] %v2474_v0  ;;  %v1524_v6 = vld [vmem:[%s3071_s2 + $0x100] sm:$0xff]  ;;  %v1525_v7 = vld [vmem:[%s3071_s2 + $0x108] sm:$0xff]  ;;  %v2120_v8 = vpack.c.bf16 %v137_v5, %v136_v3 }
  0x28   :  { %63 = vst [vmem:[#allocation2 + $0x30] sm:$0xff] %v2474_v0  ;;  %64 = vst [vmem:[#allocation2 + $0x38] sm:$0xff] %v2474_v0  ;;  %v2090_v9 = vpack.c.bf16 %v1525_v7, %v1524_v6  ;;  %v120_v10 = vld [vmem:[%s3071_s2] sm:$0xff]  ;;  %v121_v11 = vld [vmem:[%s3071_s2 + $0x8] sm:$0xff]  ;;  %2089 = vmatprep.subr.bf16.mxu0 %v2088_v4 }
  0x29   :  { %67 = vst [vmem:[#allocation2 + $0x50] sm:$0x3] %v2474_v0  ;;  %68 = vst [vmem:[#allocation2 + $0x58] sm:$0x3] %v2474_v0  ;;  %v1542_v12 = vld [vmem:[%s3071_s2 + $0x190] sm:$0xff]  ;;  %v2122_v13 = vpack.c.bf16 %v121_v11, %v120_v10  ;;  %v1543_v14 = vld [vmem:[%s3071_s2 + $0x198] sm:$0xff]  ;;  %2121 = vmatprep.subr.bf16.mxu1 %v2120_v8 }
  0x2a   :  { %v138_v15 = vld [vmem:[%s3071_s2 + $0x90] sm:$0xff]  ;;  %v139_v16 = vld [vmem:[%s3071_s2 + $0x98] sm:$0xff]  ;;  %2091 = vmatpush3.bf16.msra.mxu0 %v2090_v9  ;;  %v2092_v17 = vpack.c.bf16 %v1543_v14, %v1542_v12  ;;  %v1544_v24 = vld [vmem:[%s3071_s2 + $0x1a0] sm:$0xff] }
  0x2b   :  { %v2124_v18 = vpack.c.bf16 %v139_v16, %v138_v15  ;;  %v1526_v19 = vld [vmem:[%s3071_s2 + $0x110] sm:$0xff]  ;;  %v1527_v20 = vld [vmem:[%s3071_s2 + $0x118] sm:$0xff]  ;;  %2123 = vmatpush3.bf16.msra.mxu1 %v2122_v13  ;;  %v1545_v25 = vld [vmem:[%s3071_s2 + $0x1a8] sm:$0xff]  ;;  %v2719_v16 = vrot.slane %v2474_v0, 1 }
  0x2c   :  { %v122_v21 = vld [vmem:[%s3071_s2 + $0x10] sm:$0xff]  ;;  %v2094_v22 = vpack.c.bf16 %v1527_v20, %v1526_v19  ;;  %v123_v23 = vld [vmem:[%s3071_s2 + $0x18] sm:$0xff]  ;;  %2093 = vmatprep.subr.bf16.mxu0 %v2092_v17  ;;  %v2096_v27 = vpack.c.bf16 %v1545_v25, %v1544_v24  ;;  %v140_v28 = vld [vmem:[%s3071_s2 + $0xa0] sm:$0xff] }
  0x2d   :  { %2125 = vmatprep.subr.bf16.mxu1 %v2124_v18  ;;  %v2126_v26 = vpack.c.bf16 %v123_v23, %v122_v21  ;;  %v141_v29 = vld [vmem:[%s3071_s2 + $0xa8] sm:$0xff]  ;;  %v1528_v30 = vld [vmem:[%s3071_s2 + $0x120] sm:$0xff]  ;;  %v1546_v36 = vld [vmem:[%s3071_s2 + $0x1b0] sm:$0xff] }
  0x2e   :  { %v2128_v31 = vpack.c.bf16 %v141_v29, %v140_v28  ;;  %v1529_v32 = vld [vmem:[%s3071_s2 + $0x128] sm:$0xff]  ;;  %v124_v33 = vld [vmem:[%s3071_s2 + $0x20] sm:$0xff]  ;;  %2095 = vmatpush3.bf16.msra.mxu0 %v2094_v22  ;;  %v1547_v37 = vld [vmem:[%s3071_s2 + $0x1b8] sm:$0xff] }
  0x2f   :  { %v125_v34 = vld [vmem:[%s3071_s2 + $0x28] sm:$0xff]  ;;  %v2098_v35 = vpack.c.bf16 %v1529_v32, %v1528_v30  ;;  %v142_v38 = vld [vmem:[%s3071_s2 + $0xb0] sm:$0xff]  ;;  %2127 = vmatpush3.bf16.msra.mxu1 %v2126_v26  ;;  %2097 = vmatprep.subr.bf16.mxu0 %v2096_v27  ;;  %v2100_v40 = vpack.c.bf16 %v1547_v37, %v1546_v36  ;;  %v143_v41 = vld [vmem:[%s3071_s2 + $0xb8] sm:$0xff] }
  0x30   :  { %v2130_v39 = vpack.c.bf16 %v125_v34, %v124_v33  ;;  %v1530_v42 = vld [vmem:[%s3071_s2 + $0x130] sm:$0xff]  ;;  %v1531_v43 = vld [vmem:[%s3071_s2 + $0x138] sm:$0xff]  ;;  %2129 = vmatprep.subr.bf16.mxu1 %v2128_v31  ;;  %v2132_v44 = vpack.c.bf16 %v143_v41, %v142_v38  ;;  %v1548_v47 = vld [vmem:[%s3071_s2 + $0x1c0] sm:$0xff] }
  0x31   :  { %v126_v45 = vld [vmem:[%s3071_s2 + $0x30] sm:$0xff]  ;;  %v127_v46 = vld [vmem:[%s3071_s2 + $0x38] sm:$0xff]  ;;  %v1549_v48 = vld [vmem:[%s3071_s2 + $0x1c8] sm:$0xff]  ;;  %v2102_v51 = vpack.c.bf16 %v1531_v43, %v1530_v42 }
  0x32   :  { %v144_v49 = vld [vmem:[%s3071_s2 + $0xc0] sm:$0xff]  ;;  %v145_v50 = vld [vmem:[%s3071_s2 + $0xc8] sm:$0xff]  ;;  %2099 = vmatpush3.bf16.msra.mxu0 %v2098_v35  ;;  %v2134_v52 = vpack.c.bf16 %v127_v46, %v126_v45  ;;  %v2104_v53 = vpack.c.bf16 %v1549_v48, %v1548_v47  ;;  %v1550_v59 = vld [vmem:[%s3071_s2 + $0x1d0] sm:$0xff] }
  0x33   :  { %2131 = vmatpush3.bf16.msra.mxu1 %v2130_v39  ;;  %2101 = vmatprep.subr.bf16.mxu0 %v2100_v40  ;;  %v1532_v54 = vld [vmem:[%s3071_s2 + $0x140] sm:$0xff]  ;;  %v1533_v55 = vld [vmem:[%s3071_s2 + $0x148] sm:$0xff]  ;;  %v2136_v57 = vpack.c.bf16 %v145_v50, %v144_v49  ;;  %v1551_v60 = vld [vmem:[%s3071_s2 + $0x1d8] sm:$0xff] }
  0x34   :  { %v128_v56 = vld [vmem:[%s3071_s2 + $0x40] sm:$0xff]  ;;  %2133 = vmatprep.subr.bf16.mxu1 %v2132_v44  ;;  %v129_v58 = vld [vmem:[%s3071_s2 + $0x48] sm:$0xff]  ;;  %v146_v61 = vld [vmem:[%s3071_s2 + $0xd0] sm:$0xff]  ;;  %v2106_v63 = vpack.c.bf16 %v1533_v55, %v1532_v54  ;;  %v2108_v2 = vpack.c.bf16 %v1551_v60, %v1550_v59 }
  0x35   :  { %v147_v62 = vld [vmem:[%s3071_s2 + $0xd8] sm:$0xff]  ;;  %v2138_v1 = vpack.c.bf16 %v129_v58, %v128_v56  ;;  %v1534_v3 = vld [vmem:[%s3071_s2 + $0x150] sm:$0xff]  ;;  %v1552_v8 = vld [vmem:[%s3071_s2 + $0x1e0] sm:$0xff] }
  0x36   :  { %2103 = vmatpush3.bf16.msra.mxu0 %v2102_v51  ;;  %v1535_v4 = vld [vmem:[%s3071_s2 + $0x158] sm:$0xff]  ;;  %v130_v5 = vld [vmem:[%s3071_s2 + $0x50] sm:$0xff]  ;;  %v2140_v6 = vpack.c.bf16 %v147_v62, %v146_v61  ;;  %v1553_v9 = vld [vmem:[%s3071_s2 + $0x1e8] sm:$0xff] }
  0x37   :  { %2135 = vmatpush3.bf16.msra.mxu1 %v2134_v52  ;;  %2105 = vmatprep.subr.bf16.mxu0 %v2104_v53  ;;  %v131_v7 = vld [vmem:[%s3071_s2 + $0x58] sm:$0xff]  ;;  %v148_v10 = vld [vmem:[%s3071_s2 + $0xe0] sm:$0xff]  ;;  %v149_v11 = vld [vmem:[%s3071_s2 + $0xe8] sm:$0xff]  ;;  %v2110_v12 = vpack.c.bf16 %v1535_v4, %v1534_v3  ;;  %v2112_v18 = vpack.c.bf16 %v1553_v9, %v1552_v8 }
  0x38   :  { %2137 = vmatprep.subr.bf16.mxu1 %v2136_v57  ;;  %v1536_v13 = vld [vmem:[%s3071_s2 + $0x160] sm:$0xff]  ;;  %v1537_v14 = vld [vmem:[%s3071_s2 + $0x168] sm:$0xff]  ;;  %v2142_v17 = vpack.c.bf16 %v131_v7, %v130_v5  ;;  %v2144_v22 = vpack.c.bf16 %v149_v11, %v148_v10  ;;  %v1554_v23 = vld [vmem:[%s3071_s2 + $0x1f0] sm:$0xff] }
  0x39   :  { %v132_v15 = vld [vmem:[%s3071_s2 + $0x60] sm:$0xff]  ;;  %v133_v19 = vld [vmem:[%s3071_s2 + $0x68] sm:$0xff]  ;;  %v1555_v24 = vld [vmem:[%s3071_s2 + $0x1f8] sm:$0xff]  ;;  %v2114_v31 = vpack.c.bf16 %v1537_v14, %v1536_v13 }
  0x3a   :  { %2107 = vmatpush3.bf16.msra.mxu0 %v2106_v63  ;;  %v153_v20 = vld [vmem:[#allocation2 + $0x8] sm:$0xfe]  ;;  %v85_v21 = vld [vmem:[%s3069_s0] sm:$0xff]  ;;  %v150_v28 = vld [vmem:[%s3071_s2 + $0xf0] sm:$0xff]  ;;  %v2146_v33 = vpack.c.bf16 %v133_v19, %v132_v15  ;;  %v2116_v34 = vpack.c.bf16 %v1555_v24, %v1554_v23 }
  0x3b   :  { %2139 = vmatpush3.bf16.msra.mxu1 %v2138_v1  ;;  %2109 = vmatprep.subr.bf16.mxu0 %v2108_v2  ;;  %v176_v25 = vrot.slane %v153_v20, 1  ;;  %v86_v26 = vld [vmem:[%s3069_s0 + $0x8] sm:$0xff]  ;;  %v94_v27 = vrot.slane %v85_v21, 7  ;;  %v151_v29 = vld [vmem:[%s3071_s2 + $0xf8] sm:$0xff]  ;;  %v1538_v35 = vld [vmem:[%s3071_s2 + $0x170] sm:$0xff] }
  0x3c   :  { %2141 = vmatprep.subr.bf16.mxu1 %v2140_v6  ;;  %v95_v30 = vrot.slane %v86_v26, 7  ;;  %v1539_v36 = vld [vmem:[%s3071_s2 + $0x178] sm:$0xff]  ;;  %v134_v37 = vld [vmem:[%s3071_s2 + $0x70] sm:$0xff]  ;;  %v2148_v38 = vpack.c.bf16 %v151_v29, %v150_v28  ;;  %v1572_v40 = vld [vmem:[%s3071_s2 + $0x280] sm:$0xff] }
  0x3d   :  { %v178_v32 = vsel %vm172_vm0, %v176_v25, %v2719_v16  ;;  %106 = vst [vmem:[#allocation2] sm:$0xfe] %v94_v27  ;;  %v135_v39 = vld [vmem:[%s3071_s2 + $0x78] sm:$0xff]  ;;  %v1573_v41 = vld [vmem:[%s3071_s2 + $0x288] sm:$0xff]  ;;  %v2118_v43 = vpack.c.bf16 %v1539_v36, %v1538_v35  ;;  %v1556_v46 = vld [vmem:[%s3071_s2 + $0x200] sm:$0xff]  ;;  %v2836_v36 = vrot.slane %v2474_v0, 2 }
  0x3e   :  { %2111 = vmatpush3.bf16.msra.mxu0 %v2110_v12  ;;  %108 = vst [vmem:[#allocation2 + $0x20] sm:$0x1] %v95_v30  ;;  %298 = vmatprep.mubr.f32.mxu0 %v178_v32  ;;  %v2763_v42 = vsel %vm93_vm1, %v94_v27, %v95_v30  ;;  %v2150_v44 = vpack.c.bf16 %v135_v39, %v134_v37  ;;  %v1557_v47 = vld [vmem:[%s3071_s2 + $0x208] sm:$0xff]  ;;  %v1574_v50 = vld [vmem:[%s3071_s2 + $0x290] sm:$0xff]  ;;  %v1575_v51 = vld [vmem:[%s3071_s2 + $0x298] sm:$0xff] }
  0x3f   :  { %2143 = vmatpush3.bf16.msra.mxu1 %v2142_v17  ;;  %2113 = vmatprep.subr.bf16.mxu0 %v2112_v18  ;;  %v2152_v45 = vpack.c.bf16 %v1573_v41, %v1572_v40  ;;  %v155_v48 = vld [vmem:[#allocation2 + $0x28] sm:$0x1]  ;;  %v174_v49 = vrot.slane %v2763_v42, 1  ;;  %v157_v54 = vld [vmem:[#allocation2 + $0x38] sm:$0xfe]  ;;  %v87_v55 = vld [vmem:[%s3069_s0 + $0x10] sm:$0xff]  ;;  %v2154_v57 = vpack.c.bf16 %v1557_v47, %v1556_v46  ;;  %v2156_v62 = vpack.c.bf16 %v1575_v51, %v1574_v50 }
  0x40   :  { %2145 = vmatprep.subr.bf16.mxu1 %v2144_v22  ;;  %v181_v52 = vrot.slane %v155_v48, 1  ;;  %v88_v59 = vld [vmem:[%s3069_s0 + $0x18] sm:$0xff]  ;;  %v97_v60 = vrot.slane %v87_v55, 7  ;;  %v1558_v63 = vld [vmem:[%s3071_s2 + $0x210] sm:$0xff]  ;;  %v1576_v5 = vld [vmem:[%s3071_s2 + $0x2a0] sm:$0xff]  ;;  %v186_v8 = vrot.slane %v157_v54, 1 }
  0x41   :  { %v1559_v1 = vld [vmem:[%s3071_s2 + $0x218] sm:$0xff]  ;;  %v98_v3 = vrot.slane %v88_v59, 7  ;;  %v1577_v6 = vld [vmem:[%s3071_s2 + $0x2a8] sm:$0xff]  ;;  %v1560_v13 = vld [vmem:[%s3071_s2 + $0x220] sm:$0xff] }
  0x42   :  { %2115 = vmatpush3.bf16.msra.mxu0 %v2114_v31  ;;  %v182_v7 = vsel %vm172_vm0, %v2719_v16, %v181_v52  ;;  %109 = vst [vmem:[#allocation2 + $0x30] sm:$0xfe] %v97_v60  ;;  %v2158_v9 = vpack.c.bf16 %v1559_v1, %v1558_v63  ;;  %v159_v11 = vld [vmem:[#allocation2 + $0x58] sm:$0x1]  ;;  %v2160_v12 = vpack.c.bf16 %v1577_v6, %v1576_v5  ;;  %v1561_v14 = vld [vmem:[%s3071_s2 + $0x228] sm:$0xff]  ;;  %v1578_v17 = vld [vmem:[%s3071_s2 + $0x2b0] sm:$0xff] }
  0x43   :  { %2147 = vmatpush3.bf16.msra.mxu1 %v2146_v33  ;;  %2117 = vmatprep.subr.bf16.mxu0 %v2116_v34  ;;  %111 = vst [vmem:[#allocation2 + $0x50] sm:$0x1] %v98_v3  ;;  %v2807_v15 = vsel %vm93_vm1, %v97_v60, %v98_v3  ;;  %v1579_v18 = vld [vmem:[%s3071_s2 + $0x2b8] sm:$0xff]  ;;  %v188_v19 = vsel %vm172_vm0, %v186_v8, %v2719_v16  ;;  %v191_v20 = vrot.slane %v159_v11, 1  ;;  %v1562_v22 = vld [vmem:[%s3071_s2 + $0x230] sm:$0xff]  ;;  %v1580_v29 = vld [vmem:[%s3071_s2 + $0x2c0] sm:$0xff] }
  0x44   :  { %2149 = vmatprep.subr.bf16.mxu1 %v2148_v38  ;;  %v152_v53 = vld [vmem:[#allocation2] sm:$0xfe]  ;;  %v2162_v21 = vpack.c.bf16 %v1561_v14, %v1560_v13  ;;  %v184_v23 = vrot.slane %v2807_v15, 1  ;;  %v405_v24 = vld [vmem:[#allocation2 + $0x8] sm:$0xfc]  ;;  %v2164_v25 = vpack.c.bf16 %v1579_v18, %v1578_v17  ;;  %v1563_v26 = vld [vmem:[%s3071_s2 + $0x238] sm:$0xff] }
  0x45   :  { %v173_v56 = vrot.slane %v152_v53, 1  ;;  %v154_v58 = vld [vmem:[#allocation2 + $0x20] sm:$0x1]  ;;  %v1581_v30 = vld [vmem:[%s3071_s2 + $0x2c8] sm:$0xff]  ;;  %v192_v33 = vsel %vm172_vm0, %v2719_v16, %v191_v20  ;;  %v424_v35 = vrot.slane %v405_v24, 2  ;;  %v2166_v37 = vpack.c.bf16 %v1563_v26, %v1562_v22  ;;  %v1567_v50 = vld [vmem:[%s3071_s2 + $0x258] sm:$0xff] }
  0x46   :  { %2119 = vmatpush3.bf16.msra.mxu0 %v2118_v43  ;;  %v112_v61 = vld [vmem:[#allocation2] sm:$0xff]  ;;  %v179_v2 = vrot.slane %v154_v58, 1  ;;  %v2168_v39 = vpack.c.bf16 %v1581_v30, %v1580_v29  ;;  %v1565_v41 = vld [vmem:[%s3071_s2 + $0x248] sm:$0xff]  ;;  %v1582_v43 = vld [vmem:[%s3071_s2 + $0x2d0] sm:$0xff] }
  0x47   :  { %2151 = vmatpush3.bf16.msra.mxu1 %v2150_v44  ;;  %2153 = vmatprep.subr.bf16.mxu0 %v2152_v45  ;;  %v175_v4 = vsel %vm172_vm0, %v173_v56, %v174_v49  ;;  %v1564_v40 = vld [vmem:[%s3071_s2 + $0x240] sm:$0xff]  ;;  %v1583_v44 = vld [vmem:[%s3071_s2 + $0x2d8] sm:$0xff]  ;;  %v426_v46 = vsel %vm420_vm2, %v424_v35, %v2836_v36  ;;  %v1585_v52 = vld [vmem:[%s3071_s2 + $0x2e8] sm:$0xff] }
  0x48   :  { %v180_v10 = vsel %vm172_vm0, %v174_v49, %v179_v2  ;;  %v2170_v47 = vpack.c.bf16 %v1565_v41, %v1564_v40  ;;  %v2172_v48 = vpack.c.bf16 %v1583_v44, %v1582_v43  ;;  %v1566_v49 = vld [vmem:[%s3071_s2 + $0x250] sm:$0xff]  ;;  %v1584_v51 = vld [vmem:[%s3071_s2 + $0x2e0] sm:$0xff]  ;;  %v1569_v56 = vld [vmem:[%s3071_s2 + $0x268] sm:$0xff] }
  0x49   :  { %299 = vmatmul.mubr.f32.vlgmr.msra.gmra.mrb[0].mxu0 %v175_v4  ;;  %v156_v27 = vld [vmem:[#allocation2 + $0x30] sm:$0xfe]  ;;  %v2174_v53 = vpack.c.bf16 %v1567_v50, %v1566_v49  ;;  %v2176_v54 = vpack.c.bf16 %v1585_v52, %v1584_v51  ;;  %v1568_v55 = vld [vmem:[%s3071_s2 + $0x260] sm:$0xff]  ;;  %v1587_v58 = vld [vmem:[%s3071_s2 + $0x2f8] sm:$0xff]  ;;  %v422_v4 = vrot.slane %v2763_v42, 2 }
  0x4a   :  { %384 = vmatmul.mubr.f32.vlgmr.msra.gmra.mrb[0].mxu1 %v112_v61  ;;  %2155 = vmatpush3.bf16.msra.mxu0 %v2154_v57  ;;  %v116_v28 = vld [vmem:[#allocation2 + $0x30] sm:$0xff]  ;;  %v183_v31 = vrot.slane %v156_v27, 1  ;;  %v2178_v59 = vpack.c.bf16 %v1569_v56, %v1568_v55  ;;  %v404_v63 = vld [vmem:[#allocation2] sm:$0xfc]  ;;  %v407_v1 = vld [vmem:[#allocation2 + $0x28] sm:$0x3] }
  0x4b   :  { %2157 = vmatprep.subr.bf16.mxu0 %v2156_v62  ;;  %303 = vmatprep.mubr.f32.mxu0 %v182_v7  ;;  %v158_v32 = vld [vmem:[#allocation2 + $0x50] sm:$0x1]  ;;  %v1571_v62 = vld [vmem:[%s3071_s2 + $0x278] sm:$0xff]  ;;  %v421_v3 = vrot.slane %v404_v63, 2  ;;  %v429_v5 = vrot.slane %v407_v1, 2  ;;  %v73_v30 = vld [vmem:[#allocation3 + $0x20] sm:$0xff] }
  0x4c   :  { %388 = vmatprep.mubr.f32.mxu1 %v2474_v0  ;;  %v189_v34 = vrot.slane %v158_v32, 1  ;;  %v185_v38 = vsel %vm172_vm0, %v183_v31, %v184_v23  ;;  %v1586_v57 = vld [vmem:[%s3071_s2 + $0x2f0] sm:$0xff]  ;;  %v406_v6 = vld [vmem:[#allocation2 + $0x20] sm:$0x3]  ;;  %v409_v7 = vld [vmem:[#allocation2 + $0x38] sm:$0xfc] }
  0x4d   :  { %304 = vmatmul.mubr.f32.gmra.mrb[2].mxu0 %v180_v10  ;;  %v2180_v60 = vpack.c.bf16 %v1587_v58, %v1586_v57  ;;  %v1570_v61 = vld [vmem:[%s3071_s2 + $0x270] sm:$0xff]  ;;  %v423_v8 = vsel %vm420_vm2, %v421_v3, %v422_v4  ;;  %v430_v10 = vsel %vm420_vm2, %v2836_v36, %v429_v5  ;;  %v434_v11 = vrot.slane %v409_v7, 2  ;;  %v411_v13 = vld [vmem:[#allocation2 + $0x58] sm:$0x3]  ;;  %v74_v31 = vld [vmem:[#allocation3 + $0x28] sm:$0xff] }
  0x4e   :  { %2159 = vmatpush3.bf16.msra.mxu0 %v2158_v9  ;;  %389 = vmatmul.mubr.f32.gmra.mrb[2].mxu1 %v2763_v42  ;;  %v190_v45 = vsel %vm172_vm0, %v184_v23, %v189_v34  ;;  %v2182_v2 = vpack.c.bf16 %v1571_v62, %v1570_v61  ;;  %v427_v9 = vrot.slane %v406_v6, 2  ;;  %v432_v42 = vrot.slane %v2807_v15, 2  ;;  %v410_v20 = vld [vmem:[#allocation2 + $0x50] sm:$0x3]  ;;  %v76_v34 = vld [vmem:[#allocation3 + $0x38] sm:$0xff]  ;;  %v81_v44 = vld [vmem:[#allocation3 + $0x60] sm:$0xff] }
  0x4f   :  { %2161 = vmatprep.subr.bf16.mxu0 %v2160_v12  ;;  %308 = vmatprep.mubr.f32.mxu0 %v188_v19  ;;  %v408_v12 = vld [vmem:[#allocation2 + $0x30] sm:$0xfc]  ;;  %v436_v18 = vsel %vm420_vm2, %v434_v11, %v2836_v36  ;;  %v439_v19 = vrot.slane %v411_v13, 2  ;;  %v437_v22 = vrot.slane %v410_v20, 2  ;;  %v2907_v32 = vpack.c.bf16 %v74_v31, %v73_v30  ;;  %v80_v41 = vld [vmem:[#allocation3 + $0x58] sm:$0xff] }
  0x50   :  { %393 = vmatprep.mubr.f32.mxu1 %v2474_v0  ;;  %v428_v14 = vsel %vm420_vm2, %v422_v4, %v427_v9  ;;  %v431_v17 = vrot.slane %v408_v12, 2  ;;  %v71_v26 = vld [vmem:[#allocation3 + $0x10] sm:$0xff] }
  0x51   :  { %309 = vmatmul.mubr.f32.gmra.mrb[4].mxu0 %v185_v38  ;;  %v440_v23 = vsel %vm420_vm2, %v2836_v36, %v439_v19  ;;  %v438_v24 = vsel %vm420_vm2, %v432_v42, %v437_v22  ;;  %v78_v38 = vld [vmem:[#allocation3 + $0x48] sm:$0xff]  ;;  %v79_v40 = vld [vmem:[#allocation3 + $0x50] sm:$0xff] }
  0x52   :  { %2163 = vmatpush3.bf16.msra.mxu0 %v2162_v21  ;;  %394 = vmatmul.mubr.f32.gmra.mrb[4].mxu1 %v116_v28  ;;  %v433_v21 = vsel %vm420_vm2, %v431_v17, %v432_v42  ;;  %v72_v28 = vld [vmem:[#allocation3 + $0x18] sm:$0xff]  ;;  %v2925_v43 = vpack.c.bf16 %v80_v41, %v79_v40 }
  0x53   :  { %2165 = vmatprep.subr.bf16.mxu0 %v2164_v25  ;;  %313 = vmatprep.mubr.f32.mxu0 %v192_v33  ;;  %v69_v25 = vld [vmem:[#allocation3] sm:$0xff]  ;;  %v2900_v29 = vpack.c.bf16 %v72_v28, %v71_v26  ;;  %v75_v33 = vld [vmem:[#allocation3 + $0x30] sm:$0xff] }
  0x54   :  { %398 = vmatprep.mubr.f32.mxu1 %v2474_v0  ;;  %v2913_v35 = vpack.c.bf16 %v76_v34, %v75_v33 }
  0x55   :  { %314 = vmatmul.mubr.f32.gmra.mrb[6].mxu0 %v190_v45  ;;  %v82_v45 = vld [vmem:[#allocation3 + $0x68] sm:$0xff] }
  0x56   :  { %2167 = vmatpush3.bf16.msra.mxu0 %v2166_v37  ;;  %399 = vmatmul.mubr.f32.gmra.mrb[6].mxu1 %v2807_v15  ;;  %v70_v15 = vld [vmem:[#allocation3 + $0x8] sm:$0xff]  ;;  %v77_v37 = vld [vmem:[#allocation3 + $0x40] sm:$0xff] }
  0x57   :  { %2169 = vmatprep.subr.bf16.mxu0 %v2168_v39  ;;  %546 = vmatprep.mubr.f32.mxu0 %v426_v46  ;;  %v2898_v27 = vpack.c.bf16 %v70_v15, %v69_v25  ;;  %v2919_v39 = vpack.c.bf16 %v78_v38, %v77_v37  ;;  %v2934_v46 = vpack.c.bf16 %v82_v45, %v81_v44 }
  0x59   :  { %2185 = vmatprep.subr.bf16.mxu1 %v2898_v27 }
  0x5a   :  { %2171 = vmatpush3.bf16.msra.mxu0 %v2170_v47  ;;  %2187 = vmatpush3.bf16.msra.mxu1 %v2898_v27  ;;  %v83_v47 = vld [vmem:[#allocation3 + $0x70] sm:$0xff] }
  0x5b   :  { %2173 = vmatprep.subr.bf16.mxu0 %v2172_v48  ;;  %2189 = vmatprep.subr.bf16.mxu1 %v2900_v29  ;;  %v84_v48 = vld [vmem:[#allocation3 + $0x78] sm:$0xff] }
  0x5c   :  { %v2940_v49 = vpack.c.bf16 %v84_v48, %v83_v47 }
  0x5e   :  { %2175 = vmatpush3.bf16.msra.mxu0 %v2174_v53  ;;  %2191 = vmatpush3.bf16.msra.mxu1 %v2900_v29 }
  0x5f   :  { %2177 = vmatprep.subr.bf16.mxu0 %v2176_v54  ;;  %2193 = vmatprep.subr.bf16.mxu1 %v2907_v32 }
  0x62   :  { %2179 = vmatpush3.bf16.msra.mxu0 %v2178_v59  ;;  %2195 = vmatpush3.bf16.msra.mxu1 %v2907_v32 }
  0x63   :  { %2181 = vmatprep.subr.bf16.mxu0 %v2180_v60  ;;  %2197 = vmatprep.subr.bf16.mxu1 %v2913_v35 }
  0x66   :  { %2183 = vmatpush3.bf16.msra.mxu0 %v2182_v2  ;;  %2199 = vmatpush3.bf16.msra.mxu1 %v2913_v35 }
  0x67   :  { %2217 = vmatprep.subr.bf16.mxu0 %v2898_v27  ;;  %2201 = vmatprep.subr.bf16.mxu1 %v2919_v39 }
  0x69   :  { %547 = vmatmul.mubr.f32.vlgmr.msra.gmra.mrb[8].mxu0 %v423_v8 }
  0x6a   :  { %551 = vmatprep.mubr.f32.mxu0 %v430_v10  ;;  %2219 = vmatpush3.bf16.msra.mxu0 %v2898_v27 }
  0x6b   :  { %2221 = vmatprep.subr.bf16.mxu0 %v2900_v29  ;;  %2203 = vmatpush3.bf16.msra.mxu1 %v2919_v39 }
  0x6c   :  { %2205 = vmatprep.subr.bf16.mxu1 %v2925_v43 }
  0x6d   :  { %552 = vmatmul.mubr.f32.gmra.mrb[10].mxu0 %v428_v14 }
  0x6e   :  { %556 = vmatprep.mubr.f32.mxu0 %v436_v18  ;;  %2223 = vmatpush3.bf16.msra.mxu0 %v2900_v29 }
  0x6f   :  { %2225 = vmatprep.subr.bf16.mxu0 %v2907_v32  ;;  %2207 = vmatpush3.bf16.msra.mxu1 %v2925_v43 }
  0x70   :  { %2209 = vmatprep.subr.bf16.mxu1 %v2934_v46 }
  0x71   :  { %557 = vmatmul.mubr.f32.gmra.mrb[12].mxu0 %v433_v21 }
  0x72   :  { %561 = vmatprep.mubr.f32.mxu0 %v440_v23  ;;  %2227 = vmatpush3.bf16.msra.mxu0 %v2907_v32 }
  0x73   :  { %2229 = vmatprep.subr.bf16.mxu0 %v2913_v35  ;;  %2211 = vmatpush3.bf16.msra.mxu1 %v2934_v46 }
  0x74   :  { %2213 = vmatprep.subr.bf16.mxu1 %v2940_v49 }
  0x75   :  { %562 = vmatmul.mubr.f32.gmra.mrb[14].mxu0 %v438_v24 }
  0x76   :  { %2231 = vmatpush3.bf16.msra.mxu0 %v2913_v35 }
  0x77   :  { %2233 = vmatprep.subr.bf16.mxu0 %v2919_v39  ;;  %2215 = vmatpush3.bf16.msra.mxu1 %v2940_v49 }
  0x7a   :  { %2235 = vmatpush3.bf16.msra.mxu0 %v2919_v39 }
  0x7b   :  { %2237 = vmatprep.subr.bf16.mxu0 %v2925_v43 }
  0x7e   :  { %2239 = vmatpush3.bf16.msra.mxu0 %v2925_v43 }
  0x7f   :  { %2241 = vmatprep.subr.bf16.mxu0 %v2934_v46 }
  0x82   :  { %2243 = vmatpush3.bf16.msra.mxu0 %v2934_v46 }
  0x83   :  { %2245 = vmatprep.subr.bf16.mxu0 %v2940_v49 }
  0x86   :  { %2247 = vmatpush3.bf16.msra.mxu0 %v2940_v49 }
 0x11c   :  { %v1624_v50 = vpop.f32.mrb[0].mxu0 }
 0x11d   :  { %v1668_v51 = vpop.f32.mrb[0].mxu1  ;;  %v1625_v52 = vpop.f32.mrb[1].mxu0 }
 0x11e   :  { %v1626_v53 = vadd.f32 %v1625_v52, %v1624_v50  ;;  %v1669_v54 = vpop.f32.mrb[1].mxu1 }
 0x11f   :  { %v1670_v55 = vadd.f32 %v1669_v54, %v1668_v51 }
 0x120   :  { %v1627_v56 = vpop.f32.mrb[2].mxu0 }
 0x121   :  { %v386_v57 = vadd.f32 %v1670_v55, %v1626_v53  ;;  %v1671_v58 = vpop.f32.mrb[2].mxu1  ;;  %v1628_v59 = vpop.f32.mrb[3].mxu0 }
 0x122   :  { %v1629_v60 = vadd.f32 %v1628_v59, %v1627_v56  ;;  %v1672_v61 = vpop.f32.mrb[3].mxu1 }
 0x123   :  { %v1673_v62 = vadd.f32 %v1672_v61, %v1671_v58 }
 0x124   :  { %v1630_v2 = vpop.f32.mrb[4].mxu0 }
 0x125   :  { %v391_v63 = vadd.f32 %v1673_v62, %v1629_v60  ;;  %v1674_v1 = vpop.f32.mrb[4].mxu1  ;;  %v1631_v4 = vpop.f32.mrb[5].mxu0 }
 0x126   :  { %v1675_v3 = vpop.f32.mrb[5].mxu1  ;;  %v1632_v6 = vadd.f32 %v1631_v4, %v1630_v2  ;;  %v832_v4 = vld [vmem:[#allocation5 + $0x8] sm:$0xff] }
 0x127   :  { %v1676_v5 = vadd.f32 %v1675_v3, %v1674_v1  ;;  %v848_v1 = vld [vmem:[#allocation5 + $0x88] sm:$0xff]  ;;  %v831_v3 = vld [vmem:[#allocation5] sm:$0xff] }
 0x128   :  { %v1633_v9 = vpop.f32.mrb[6].mxu0 }
 0x129   :  { %v1677_v7 = vpop.f32.mrb[6].mxu1  ;;  %v396_v8 = vadd.f32 %v1676_v5, %v1632_v6  ;;  %v1634_v11 = vpop.f32.mrb[7].mxu0  ;;  %v2282_v5 = vpack.c.bf16 %v832_v4, %v831_v3  ;;  %v928_v6 = vld [vmem:[#allocation5 + $0x180] sm:$0xff] }
 0x12a   :  { %v1678_v10 = vpop.f32.mrb[7].mxu1  ;;  %v1635_v13 = vadd.f32 %v1634_v11, %v1633_v9  ;;  %v912_v9 = vld [vmem:[#allocation5 + $0x100] sm:$0xff] }
 0x12b   :  { %v1679_v12 = vadd.f32 %v1678_v10, %v1677_v7  ;;  %v929_v7 = vld [vmem:[#allocation5 + $0x188] sm:$0xff]  ;;  %v936_v4 = vld [vmem:[#allocation5 + $0x1c0] sm:$0xff] }
 0x12c   :  { %v913_v10 = vld [vmem:[#allocation5 + $0x108] sm:$0xff] }
 0x12d   :  { %v401_v14 = vadd.f32 %v1679_v12, %v1635_v13  ;;  %v2250_v11 = vpack.c.bf16 %v913_v10, %v912_v9  ;;  %v849_v12 = vld [vmem:[#allocation5 + $0x90] sm:$0xff]  ;;  %v850_v13 = vld [vmem:[#allocation5 + $0x98] sm:$0xff] }
 0x12e   :  { %v857_v9 = vld [vmem:[#allocation5 + $0xd0] sm:$0xff]  ;;  %v858_v10 = vld [vmem:[#allocation5 + $0xd8] sm:$0xff] }
 0x13c   :  { %v1712_v17 = vpop.f32.mrb[8].mxu0 }
 0x13d   :  { %v1713_v42 = vpop.f32.mrb[9].mxu0 }
 0x13e   :  { %v1714_v18 = vadd.f32 %v1713_v42, %v1712_v17  ;;  %v833_v17 = vld [vmem:[#allocation5 + $0x10] sm:$0xff] }
 0x140   :  { %v567_v19 = vadd.f32 %v1714_v18, %v386_v57  ;;  %v1715_v20 = vpop.f32.mrb[10].mxu0  ;;  %v930_v18 = vld [vmem:[#allocation5 + $0x190] sm:$0xff] }
 0x141   :  { %v1716_v21 = vpop.f32.mrb[11].mxu0 }
 0x142   :  { %v1717_v22 = vadd.f32 %v1716_v21, %v1715_v20  ;;  %1968 = vmatprep.mubr.f32.mxu1 %v567_v19  ;;  %v914_v21 = vld [vmem:[#allocation5 + $0x110] sm:$0xff] }
 0x144   :  { %v568_v23 = vadd.f32 %v1717_v22, %v391_v63  ;;  %v1718_v24 = vpop.f32.mrb[12].mxu0  ;;  %v847_v63 = vld [vmem:[#allocation5 + $0x80] sm:$0xff]  ;;  %v915_v22 = vld [vmem:[#allocation5 + $0x118] sm:$0xff] }
 0x145   :  { %v1719_v25 = vpop.f32.mrb[13].mxu0  ;;  %v2280_v2 = vpack.c.bf16 %v848_v1, %v847_v63  ;;  %v839_v1 = vld [vmem:[#allocation5 + $0x40] sm:$0xff] }
 0x146   :  { %v1720_v15 = vadd.f32 %v1719_v25, %v1718_v24  ;;  %1969 = vmatmul.mubr.f32.vlgmr.msra.gmra.mrb[8].mxu1 %v568_v23  ;;  %v851_v24 = vld [vmem:[#allocation5 + $0xa0] sm:$0xff]  ;;  %v852_v25 = vld [vmem:[#allocation5 + $0xa8] sm:$0xff] }
 0x147   :  { %2281 = vmatprep.subr.bf16.mxu0 %v2280_v2  ;;  %v840_v2 = vld [vmem:[#allocation5 + $0x48] sm:$0xff] }
 0x148   :  { %v569_v26 = vadd.f32 %v1720_v15, %v396_v8  ;;  %v1721_v28 = vpop.f32.mrb[14].mxu0  ;;  %v2248_v8 = vpack.c.bf16 %v929_v7, %v928_v6  ;;  %v2288_v15 = vpack.c.bf16 %v852_v25, %v851_v24  ;;  %v2298_v3 = vpack.c.bf16 %v840_v2, %v839_v1  ;;  %v920_v6 = vld [vmem:[#allocation5 + $0x140] sm:$0xff] }
 0x149   :  { %v1722_v30 = vpop.f32.mrb[15].mxu0  ;;  %v843_v24 = vld [vmem:[#allocation5 + $0x60] sm:$0xff] }
 0x14a   :  { %v1723_v31 = vadd.f32 %v1722_v30, %v1721_v28  ;;  %1971 = vmatprep.mubr.f32.mxu1 %v569_v26  ;;  %2249 = vmatprep.subr.bf16.mxu1 %v2248_v8  ;;  %v836_v28 = vld [vmem:[#allocation5 + $0x28] sm:$0xff] }
 0x14b   :  { %2251 = vmatpush3.bf16.msra.mxu1 %v2250_v11  ;;  %v921_v8 = vld [vmem:[#allocation5 + $0x148] sm:$0xff] }
 0x14c   :  { %v570_v33 = vadd.f32 %v1723_v31, %v401_v14  ;;  %v2284_v14 = vpack.c.bf16 %v850_v13, %v849_v12  ;;  %v932_v31 = vld [vmem:[#allocation5 + $0x1a0] sm:$0xff]  ;;  %v2266_v11 = vpack.c.bf16 %v921_v8, %v920_v6  ;;  %v2300_v12 = vpack.c.bf16 %v858_v10, %v857_v9  ;;  %v841_v13 = vld [vmem:[#allocation5 + $0x50] sm:$0xff] }
 0x14e   :  { %1972 = vmatmul.mubr.f32.gmra.mrb[10].mxu1 %v570_v33 }
 0x219   :  { %v1970_v34 = vpop.f32.mrb[8].mxu1 }
 0x21a   :  { %v637_v37 = vpop.f32.mrb[9].mxu1 }
 0x21b   :  { %v656_v38 = vadd.f32 %v1970_v34, %v637_v37  ;;  %v916_v37 = vld [vmem:[#allocation5 + $0x120] sm:$0xff] }
 0x221   :  { %v1973_v40 = vpop.f32.mrb[10].mxu1 }
 0x222   :  { %v647_v41 = vpop.f32.mrb[11].mxu1 }
 0x223   :  { %v657_v44 = vadd.f32 %v656_v38, %v647_v41  ;;  %v917_v38 = vld [vmem:[#allocation5 + $0x128] sm:$0xff]  ;;  %v853_v41 = vld [vmem:[#allocation5 + $0xb0] sm:$0xff] }
 0x225   :  { %v658_v45 = vadd.f32 %v1973_v40, %v657_v44  ;;  %v2258_v40 = vpack.c.bf16 %v917_v38, %v916_v37  ;;  %v854_v44 = vld [vmem:[#allocation5 + $0xb8] sm:$0xff]  ;;  %v861_v37 = vld [vmem:[#allocation5 + $0xf0] sm:$0xff] }
 0x226   :  { %v862_v38 = vld [vmem:[#allocation5 + $0xf8] sm:$0xff] }
 0x227   :  { %v659_v47 = vrot.slane %v658_v45, 4 }
 0x229   :  { %v660_v48 = vadd.f32 %v659_v47, %v658_v45  ;;  %v2292_v45 = vpack.c.bf16 %v854_v44, %v853_v41  ;;  %v837_v47 = vld [vmem:[#allocation5 + $0x30] sm:$0xff]  ;;  %v846_v41 = vld [vmem:[#allocation5 + $0x78] sm:$0xff] }
 0x22b   :  { %v661_v50 = vrot.slane %v660_v48, 2 }
 0x22d   :  { %v662_v51 = vadd.f32 %v661_v50, %v660_v48  ;;  %v838_v48 = vld [vmem:[#allocation5 + $0x38] sm:$0xff] }
 0x22e   :  { %v2294_v50 = vpack.c.bf16 %v838_v48, %v837_v47  ;;  %v942_v47 = vld [vmem:[#allocation5 + $0x1f0] sm:$0xff]  ;;  %v943_v48 = vld [vmem:[#allocation5 + $0x1f8] sm:$0xff] }
 0x22f   :  { %v663_v52 = vrot.slane %v662_v51, 1 }
 0x231   :  { %v664_v53 = vadd.f32 %v663_v52, %v662_v51  ;;  %v934_v51 = vld [vmem:[#allocation5 + $0x1b0] sm:$0xff]  ;;  %v935_v52 = vld [vmem:[#allocation5 + $0x1b8] sm:$0xff] }
 0x233   :  { %v665_v54 = vmul.f32 0.001953125, %v664_v53  ;;  %v2260_v53 = vpack.c.bf16 %v935_v52, %v934_v51  ;;  %v926_v51 = vld [vmem:[#allocation5 + $0x170] sm:$0xff]  ;;  %v927_v52 = vld [vmem:[#allocation5 + $0x178] sm:$0xff] }
 0x235   :  { %v2946_v55 = vsub.f32 %v567_v19, %v665_v54  ;;  %v2948_v56 = vsub.f32 %v568_v23, %v665_v54  ;;  %v2950_v57 = vsub.f32 %v569_v26, %v665_v54  ;;  %v2956_v60 = vsub.f32 %v570_v33, %v665_v54  ;;  %v931_v19 = vld [vmem:[#allocation5 + $0x198] sm:$0xff]  ;;  %v835_v26 = vld [vmem:[#allocation5 + $0x20] sm:$0xff]  ;;  %v933_v33 = vld [vmem:[#allocation5 + $0x1a8] sm:$0xff] }
 0x236   :  { %v2252_v20 = vpack.c.bf16 %v931_v19, %v930_v18  ;;  %v2254_v23 = vpack.c.bf16 %v915_v22, %v914_v21  ;;  %v2290_v30 = vpack.c.bf16 %v836_v28, %v835_v26  ;;  %v2256_v34 = vpack.c.bf16 %v933_v33, %v932_v31  ;;  %v918_v54 = vld [vmem:[#allocation5 + $0x130] sm:$0xff]  ;;  %v923_v19 = vld [vmem:[#allocation5 + $0x158] sm:$0xff]  ;;  %v859_v22 = vld [vmem:[#allocation5 + $0xe0] sm:$0xff] }
 0x237   :  { %v670_v58 = vmul.f32 %v2946_v55, %v2946_v55  ;;  %v671_v59 = vmul.f32 %v2948_v56, %v2948_v56  ;;  %v672_v61 = vmul.f32 %v2950_v57, %v2950_v57  ;;  %v673_v62 = vmul.f32 %v2956_v60, %v2956_v60  ;;  %v922_v18 = vld [vmem:[#allocation5 + $0x150] sm:$0xff]  ;;  %v940_v26 = vld [vmem:[#allocation5 + $0x1e0] sm:$0xff]  ;;  %v941_v28 = vld [vmem:[#allocation5 + $0x1e8] sm:$0xff] }
 0x238   :  { %2253 = vmatprep.subr.bf16.mxu1 %v2252_v20  ;;  %v2270_v21 = vpack.c.bf16 %v923_v19, %v922_v18  ;;  %v2272_v31 = vpack.c.bf16 %v941_v28, %v940_v26  ;;  %v924_v33 = vld [vmem:[#allocation5 + $0x160] sm:$0xff] }
 0x239   :  { %2006 = vmatprep.mubr.f32.mxu0 %v670_v58  ;;  %2255 = vmatpush3.bf16.msra.mxu1 %v2254_v23  ;;  %v919_v58 = vld [vmem:[#allocation5 + $0x138] sm:$0xff]  ;;  %v860_v23 = vld [vmem:[#allocation5 + $0xe8] sm:$0xff]  ;;  %v1588_v18 = vld [vmem:[%s3072_s3] ss:$0 sm:$0xff] }
 0x23a   :  { %2007 = vmatmul.mubr.f32.vlgmr.msra.gmra.mrb[16].mxu0 %v671_v59  ;;  %2257 = vmatprep.subr.bf16.mxu1 %v2256_v34  ;;  %v2262_v59 = vpack.c.bf16 %v919_v58, %v918_v54  ;;  %v2304_v25 = vpack.c.bf16 %v860_v23, %v859_v22  ;;  %v925_v34 = vld [vmem:[#allocation5 + $0x168] sm:$0xff]  ;;  %v2278_v54 = vpack.c.bf16 %v927_v52, %v926_v51  ;;  %v1589_v23 = vld [vmem:[%s3073_s4] ss:$0 sm:$0xff]  ;;  %v1177_v51 = vld [vmem:[#allocation5 + $0x290] sm:$0xff] }
 0x23b   :  { %2009 = vmatprep.mubr.f32.mxu0 %v672_v61  ;;  %2283 = vmatpush3.bf16.msra.mxu0 %v2282_v5  ;;  %v855_v61 = vld [vmem:[#allocation5 + $0xc0] sm:$0xff]  ;;  %v937_v5 = vld [vmem:[#allocation5 + $0x1c8] sm:$0xff]  ;;  %v2274_v44 = vpack.c.bf16 %v925_v34, %v924_v33  ;;  %v1178_v52 = vld [vmem:[#allocation5 + $0x298] sm:$0xff] }
 0x23c   :  { %2285 = vmatprep.subr.bf16.mxu0 %v2284_v14  ;;  %v2264_v7 = vpack.c.bf16 %v937_v5, %v936_v4  ;;  %v842_v14 = vld [vmem:[#allocation5 + $0x58] sm:$0xff]  ;;  %v864_v58 = vld [vmem:[#allocation2 + $0x8] sm:$0xfe] }
 0x23d   :  { %2259 = vmatpush3.bf16.msra.mxu1 %v2258_v40  ;;  %v845_v40 = vld [vmem:[#allocation5 + $0x70] sm:$0xff] }
 0x23e   :  { %2010 = vmatmul.mubr.f32.gmra.mrb[18].mxu0 %v673_v62  ;;  %v856_v62 = vld [vmem:[#allocation5 + $0xc8] sm:$0xff]  ;;  %2261 = vmatprep.subr.bf16.mxu1 %v2260_v53  ;;  %v2310_v53 = vpack.c.bf16 %v846_v41, %v845_v40 }
 0x23f   :  { %1093 = vmatprep.mubr.f32.mxu0 %v2474_v0  ;;  %v834_v0 = vld [vmem:[#allocation5 + $0x18] sm:$0xff]  ;;  %v2296_v63 = vpack.c.bf16 %v856_v62, %v855_v61  ;;  %v1175_v61 = vld [vmem:[#allocation5 + $0x280] sm:$0xff]  ;;  %v1176_v62 = vld [vmem:[#allocation5 + $0x288] sm:$0xff] }
 0x240   :  { %v2286_v42 = vpack.c.bf16 %v834_v0, %v833_v17  ;;  %v938_v17 = vld [vmem:[#allocation5 + $0x1d0] sm:$0xff]  ;;  %v2302_v0 = vpack.c.bf16 %v842_v14, %v841_v13 }
 0x241   :  { %2263 = vmatpush3.bf16.msra.mxu1 %v2262_v59  ;;  %v886_v59 = vrot.slane %v864_v58, 1 }
 0x242   :  { %2287 = vmatpush3.bf16.msra.mxu0 %v2286_v42  ;;  %2265 = vmatprep.subr.bf16.mxu1 %v2264_v7  ;;  %v939_v42 = vld [vmem:[#allocation5 + $0x1d8] sm:$0xff] }
 0x243   :  { %2289 = vmatprep.subr.bf16.mxu0 %v2288_v15  ;;  %v2268_v20 = vpack.c.bf16 %v939_v42, %v938_v17  ;;  %v844_v15 = vld [vmem:[#allocation5 + $0x68] sm:$0xff]  ;;  %v888_v1 = vsel %vm172_vm0, %v886_v59, %v2719_v16 }
 0x244   :  { %1008 = vmatprep.mubr.f32.mxu1 %v888_v1  ;;  %v2417_v1 = vld [vmem:[#allocation2 + $0x8] sm:$0xff] }
 0x245   :  { %2267 = vmatpush3.bf16.msra.mxu1 %v2266_v11 }
 0x246   :  { %2291 = vmatpush3.bf16.msra.mxu0 %v2290_v30  ;;  %2269 = vmatprep.subr.bf16.mxu1 %v2268_v20  ;;  %v2306_v30 = vpack.c.bf16 %v844_v15, %v843_v24 }
 0x247   :  { %2293 = vmatprep.subr.bf16.mxu0 %v2292_v45  ;;  %v2308_v45 = vpack.c.bf16 %v862_v38, %v861_v37 }
 0x249   :  { %2271 = vmatpush3.bf16.msra.mxu1 %v2270_v21 }
 0x24a   :  { %2295 = vmatpush3.bf16.msra.mxu0 %v2294_v50  ;;  %2273 = vmatprep.subr.bf16.mxu1 %v2272_v31  ;;  %v2276_v50 = vpack.c.bf16 %v943_v48, %v942_v47  ;;  %v1159_v47 = vld [vmem:[#allocation5 + $0x200] sm:$0xff]  ;;  %v1160_v48 = vld [vmem:[#allocation5 + $0x208] sm:$0xff] }
 0x24b   :  { %2297 = vmatprep.subr.bf16.mxu0 %v2296_v63  ;;  %v2312_v63 = vpack.c.bf16 %v1176_v62, %v1175_v61 }
 0x24d   :  { %2275 = vmatpush3.bf16.msra.mxu1 %v2274_v44 }
 0x24e   :  { %2299 = vmatpush3.bf16.msra.mxu0 %v2298_v3  ;;  %2277 = vmatprep.subr.bf16.mxu1 %v2276_v50 }
 0x24f   :  { %2301 = vmatprep.subr.bf16.mxu0 %v2300_v12 }
 0x251   :  { %2279 = vmatpush3.bf16.msra.mxu1 %v2278_v54 }
 0x252   :  { %2303 = vmatpush3.bf16.msra.mxu0 %v2302_v0  ;;  %2313 = vmatprep.subr.bf16.mxu1 %v2312_v63  ;;  %v2314_v63 = vpack.c.bf16 %v1160_v48, %v1159_v47 }
 0x253   :  { %2305 = vmatprep.subr.bf16.mxu0 %v2304_v25 }
 0x256   :  { %2307 = vmatpush3.bf16.msra.mxu0 %v2306_v30 }
 0x257   :  { %2309 = vmatprep.subr.bf16.mxu0 %v2308_v45  ;;  %v866_v45 = vld [vmem:[#allocation2 + $0x28] sm:$0x1] }
 0x258   :  { %v891_v50 = vrot.slane %v866_v45, 1  ;;  %v1168_v45 = vld [vmem:[#allocation5 + $0x248] sm:$0xff] }
 0x25a   :  { %2311 = vmatpush3.bf16.msra.mxu0 %v2310_v53  ;;  %v868_v53 = vld [vmem:[#allocation2 + $0x38] sm:$0xfe] }
 0x25b   :  { %2345 = vmatprep.subr.bf16.mxu0 %v2898_v27 }
 0x30d   :  { %v2008_v2 = vpop.f32.mrb[16].mxu0 }
 0x30e   :  { %v740_v3 = vpop.f32.mrb[17].mxu0 }
 0x30f   :  { %v759_v4 = vadd.f32 %v2008_v2, %v740_v3  ;;  %v892_v2 = vsel %vm172_vm0, %v2719_v16, %v891_v50  ;;  %v2316_v3 = vpack.c.bf16 %v1178_v52, %v1177_v51  ;;  %v1185_v50 = vld [vmem:[#allocation5 + $0x2d0] sm:$0xff]  ;;  %v1186_v51 = vld [vmem:[#allocation5 + $0x2d8] sm:$0xff] }
 0x311   :  { %v2011_v5 = vpop.f32.mrb[18].mxu0 }
 0x312   :  { %v750_v6 = vpop.f32.mrb[19].mxu0 }
 0x313   :  { %v760_v7 = vadd.f32 %v759_v4, %v750_v6  ;;  %v1161_v4 = vld [vmem:[#allocation5 + $0x210] sm:$0xff] }
 0x315   :  { %v761_v8 = vadd.f32 %v2011_v5, %v760_v7  ;;  %v1162_v5 = vld [vmem:[#allocation5 + $0x218] sm:$0xff] }
 0x316   :  { %v2318_v16 = vpack.c.bf16 %v1162_v5, %v1161_v4  ;;  %v1190_v4 = vld [vmem:[#allocation5 + $0x2f8] sm:$0xff] }
 0x317   :  { %v762_v9 = vrot.slane %v761_v8, 4 }
 0x319   :  { %v763_v10 = vadd.f32 %v762_v9, %v761_v8  ;;  %v896_v8 = vrot.slane %v868_v53, 1  ;;  %v897_v9 = vrot.slane %v2417_v1, 1  ;;  %v2332_v53 = vpack.c.bf16 %v1186_v51, %v1185_v50 }
 0x31b   :  { %v764_v11 = vrot.slane %v763_v10, 2 }
 0x31d   :  { %v765_v12 = vadd.f32 %v764_v11, %v763_v10  ;;  %v1179_v10 = vld [vmem:[#allocation5 + $0x2a0] sm:$0xff]  ;;  %v1180_v11 = vld [vmem:[#allocation5 + $0x2a8] sm:$0xff] }
 0x31f   :  { %v766_v13 = vrot.slane %v765_v12, 1 }
 0x321   :  { %v767_v14 = vadd.f32 %v766_v13, %v765_v12  ;;  %v870_v13 = vld [vmem:[#allocation2 + $0x58] sm:$0x1] }
 0x323   :  { %v768_v17 = vmul.f32 0.001953125, %v767_v14  ;;  %v2320_v14 = vpack.c.bf16 %v1180_v11, %v1179_v10 }
 0x325   :  { %v769_v0 = vadd.f32 1e-05, %v768_v17  ;;  %v1163_v17 = vld [vmem:[#allocation5 + $0x220] sm:$0xff] }
 0x327   :  { %2413 = vrsqrt.f32 %v769_v0  ;;  %v1164_v0 = vld [vmem:[#allocation5 + $0x228] sm:$0xff] }
 0x331   :  { %v2414_v42 = vpop.eup %2413 }
 0x332   :  { %v771_v19 = vmul.f32 %v2414_v42, %v2946_v55  ;;  %v772_v20 = vmul.f32 %v2414_v42, %v2948_v56  ;;  %v773_v21 = vmul.f32 %v2414_v42, %v2950_v57  ;;  %v774_v22 = vmul.f32 %v2414_v42, %v2956_v60 }
 0x334   :  { %v782_v24 = vmul.f32 %v1588_v18, %v771_v19  ;;  %v783_v25 = vmul.f32 %v1588_v18, %v772_v20  ;;  %v784_v15 = vmul.f32 %v1588_v18, %v773_v21  ;;  %v785_v26 = vmul.f32 %v1588_v18, %v774_v22  ;;  %v1181_v21 = vld [vmem:[#allocation5 + $0x2b0] sm:$0xff]  ;;  %v1182_v22 = vld [vmem:[#allocation5 + $0x2b8] sm:$0xff] }
 0x335   :  { %v898_v18 = vsel %vm172_vm0, %v896_v8, %v897_v9  ;;  %v901_v20 = vrot.slane %v870_v13, 1  ;;  %v1174_v8 = vld [vmem:[#allocation5 + $0x278] sm:$0xff] }
 0x336   :  { %v793_v28 = vadd.f32 %v1589_v23, %v782_v24  ;;  %v794_v30 = vadd.f32 %v1589_v23, %v783_v25  ;;  %v795_v31 = vadd.f32 %v1589_v23, %v784_v15  ;;  %v796_v33 = vadd.f32 %v1589_v23, %v785_v26  ;;  %v1115_v23 = vld [vmem:[#allocation2 + $0x8] sm:$0xfc] }
 0x337   :  { %v2322_v26 = vpack.c.bf16 %v1164_v0, %v1163_v17 }
 0x338   :  { %v797_v34 = vmax.f32 %v793_v28, 0.0  ;;  %v798_v55 = vmax.f32 %v794_v30, 0.0  ;;  %v799_v37 = vmax.f32 %v795_v31, 0.0  ;;  %v800_v56 = vmax.f32 %v796_v33, 0.0  ;;  %v1165_v30 = vld [vmem:[#allocation5 + $0x230] sm:$0xff]  ;;  %v1166_v31 = vld [vmem:[#allocation5 + $0x238] sm:$0xff] }
 0x339   :  { %v2324_v28 = vpack.c.bf16 %v1182_v22, %v1181_v21  ;;  %v1133_v33 = vrot.slane %v1115_v23, 2 }
 0x33a   :  { %v805_v38 = vrot.slane %v797_v34, 7  ;;  %v806_v57 = vrot.slane %v798_v55, 7  ;;  %v808_v40 = vrot.slane %v799_v37, 7  ;;  %v809_v60 = vrot.slane %v800_v56, 7  ;;  %v1183_v56 = vld [vmem:[#allocation5 + $0x2c0] sm:$0xff] }
 0x33b   :  { %v902_v55 = vsel %vm172_vm0, %v897_v9, %v901_v20  ;;  %v1135_v47 = vsel %vm420_vm2, %v1133_v33, %v2836_v36  ;;  %v1117_v9 = vld [vmem:[#allocation2 + $0x28] sm:$0x3]  ;;  %v1121_v20 = vld [vmem:[#allocation2 + $0x58] sm:$0x3] }
 0x33c   :  { %817 = vst [vmem:[#allocation2] sm:$0xfe] %v805_v38  ;;  %v2977_v41 = vsel %vm93_vm1, %v805_v38, %v806_v57  ;;  %819 = vst [vmem:[#allocation2 + $0x20] sm:$0x1] %v806_v57  ;;  %v2980_v44 = vsel %vm93_vm1, %v808_v40, %v809_v60  ;;  %v1184_v38 = vld [vmem:[#allocation5 + $0x2c8] sm:$0xff]  ;;  %v2326_v57 = vpack.c.bf16 %v1166_v31, %v1165_v30  ;;  %v1148_v23 = vrot.slane %v1121_v20, 2 }
 0x33d   :  { %820 = vst [vmem:[#allocation2 + $0x30] sm:$0xfe] %v808_v40  ;;  %822 = vst [vmem:[#allocation2 + $0x50] sm:$0x1] %v809_v60  ;;  %v884_v62 = vrot.slane %v2977_v41, 1  ;;  %v894_v15 = vrot.slane %v2980_v44, 1  ;;  %v2328_v40 = vpack.c.bf16 %v1184_v38, %v1183_v56 }
 0x33e   :  { %v1167_v60 = vld [vmem:[#allocation5 + $0x240] sm:$0xff]  ;;  %v1131_v17 = vrot.slane %v2977_v41, 2 }
 0x33f   :  { %v2330_v52 = vpack.c.bf16 %v1168_v45, %v1167_v60 }
 0x343   :  { %v823_v54 = vld [vmem:[#allocation2] sm:$0xff] }
 0x344   :  { %v863_v58 = vld [vmem:[#allocation2] sm:$0xfe]  ;;  %v865_v59 = vld [vmem:[#allocation2 + $0x20] sm:$0x1]  ;;  %1094 = vmatmul.mubr.f32.vlgmr.msra.gmra.mrb[20].mxu0 %v823_v54  ;;  %v867_v12 = vld [vmem:[#allocation2 + $0x30] sm:$0xfe] }
 0x345   :  { %v883_v61 = vrot.slane %v863_v58, 1  ;;  %1098 = vmatprep.mubr.f32.mxu0 %v2417_v1  ;;  %2347 = vmatpush3.bf16.msra.mxu0 %v2898_v27  ;;  %v889_v7 = vrot.slane %v865_v59, 1  ;;  %v893_v19 = vrot.slane %v867_v12, 1  ;;  %v827_v24 = vld [vmem:[#allocation2 + $0x30] sm:$0xff]  ;;  %v1170_v58 = vld [vmem:[#allocation5 + $0x258] sm:$0xff]  ;;  %v1187_v59 = vld [vmem:[#allocation5 + $0x2e0] sm:$0xff] }
 0x346   :  { %2349 = vmatprep.subr.bf16.mxu0 %v2900_v29  ;;  %v869_v25 = vld [vmem:[#allocation2 + $0x50] sm:$0x1]  ;;  %v1114_v10 = vld [vmem:[#allocation2] sm:$0xfc]  ;;  %v1138_v12 = vrot.slane %v1117_v9, 2 }
 0x347   :  { %v885_v6 = vsel %vm172_vm0, %v883_v61, %v884_v62  ;;  %v890_v42 = vsel %vm172_vm0, %v884_v62, %v889_v7  ;;  %v895_v34 = vsel %vm172_vm0, %v893_v19, %v894_v15  ;;  %v899_v37 = vrot.slane %v869_v25, 1  ;;  %v1169_v54 = vld [vmem:[#allocation5 + $0x250] sm:$0xff]  ;;  %v1188_v61 = vld [vmem:[#allocation5 + $0x2e8] sm:$0xff] }
 0x348   :  { %1009 = vmatmul.mubr.f32.vlgmr.msra.gmra.mrb[12].mxu1 %v885_v6  ;;  %1099 = vmatmul.mubr.f32.gmra.mrb[22].mxu0 %v2977_v41  ;;  %v2334_v62 = vpack.c.bf16 %v1170_v58, %v1169_v54  ;;  %v1173_v7 = vld [vmem:[#allocation5 + $0x270] sm:$0xff]  ;;  %v1130_v13 = vrot.slane %v1114_v10, 2  ;;  %v1139_v0 = vsel %vm420_vm2, %v2836_v36, %v1138_v12 }
 0x349   :  { %2315 = vmatpush3.bf16.msra.mxu1 %v2314_v63  ;;  %1013 = vmatprep.mubr.f32.mxu1 %v892_v2  ;;  %v900_v48 = vsel %vm172_vm0, %v894_v15, %v899_v37  ;;  %v2336_v63 = vpack.c.bf16 %v1188_v61, %v1187_v59  ;;  %v1172_v2 = vld [vmem:[#allocation5 + $0x268] sm:$0xff]  ;;  %v2342_v11 = vpack.c.bf16 %v1174_v8, %v1173_v7  ;;  %v1118_v21 = vld [vmem:[#allocation2 + $0x30] sm:$0xfc]  ;;  %v1120_v25 = vld [vmem:[#allocation2 + $0x50] sm:$0x3]  ;;  %v1141_v15 = vrot.slane %v2980_v44, 2 }
 0x34a   :  { %1103 = vmatprep.mubr.f32.mxu0 %v2417_v1  ;;  %2317 = vmatprep.subr.bf16.mxu1 %v2316_v3  ;;  %v1189_v3 = vld [vmem:[#allocation5 + $0x2f0] sm:$0xff] }
 0x34b   :  { %2351 = vmatpush3.bf16.msra.mxu0 %v2900_v29  ;;  %v2340_v6 = vpack.c.bf16 %v1190_v4, %v1189_v3 }
 0x34c   :  { %1014 = vmatmul.mubr.f32.gmra.mrb[14].mxu1 %v890_v42  ;;  %2353 = vmatprep.subr.bf16.mxu0 %v2907_v32 }
 0x34d   :  { %1104 = vmatmul.mubr.f32.gmra.mrb[24].mxu0 %v827_v24  ;;  %2319 = vmatpush3.bf16.msra.mxu1 %v2318_v16  ;;  %v1119_v16 = vld [vmem:[#allocation2 + $0x38] sm:$0xfc]  ;;  %v1140_v24 = vrot.slane %v1118_v21, 2 }
 0x34e   :  { %1018 = vmatprep.mubr.f32.mxu1 %v898_v18  ;;  %1108 = vmatprep.mubr.f32.mxu0 %v2417_v1  ;;  %v1171_v1 = vld [vmem:[#allocation5 + $0x260] sm:$0xff]  ;;  %v1143_v42 = vrot.slane %v1119_v16, 2  ;;  %v1132_v18 = vsel %vm420_vm2, %v1130_v13, %v1131_v17 }
 0x34f   :  { %2321 = vmatprep.subr.bf16.mxu1 %v2320_v14  ;;  %2355 = vmatpush3.bf16.msra.mxu0 %v2907_v32  ;;  %v2338_v5 = vpack.c.bf16 %v1172_v2, %v1171_v1  ;;  %v1116_v14 = vld [vmem:[#allocation2 + $0x20] sm:$0x3] }
 0x350   :  { %1019 = vmatmul.mubr.f32.gmra.mrb[16].mxu1 %v895_v34  ;;  %2357 = vmatprep.subr.bf16.mxu0 %v2913_v35  ;;  %v1136_v19 = vrot.slane %v1116_v14, 2  ;;  %v1145_v22 = vsel %vm420_vm2, %v1143_v42, %v2836_v36 }
 0x351   :  { %1109 = vmatmul.mubr.f32.gmra.mrb[26].mxu0 %v2980_v44  ;;  %2323 = vmatpush3.bf16.msra.mxu1 %v2322_v26  ;;  %v1149_v26 = vsel %vm420_vm2, %v2836_v36, %v1148_v23 }
 0x352   :  { %1023 = vmatprep.mubr.f32.mxu1 %v902_v55  ;;  %2325 = vmatprep.subr.bf16.mxu1 %v2324_v28  ;;  %v1137_v41 = vsel %vm420_vm2, %v1131_v17, %v1136_v19  ;;  %v1146_v28 = vrot.slane %v1120_v25, 2 }
 0x353   :  { %2359 = vmatpush3.bf16.msra.mxu0 %v2913_v35 }
 0x354   :  { %1024 = vmatmul.mubr.f32.gmra.mrb[18].mxu1 %v900_v48  ;;  %2361 = vmatprep.subr.bf16.mxu0 %v2919_v39  ;;  %v1147_v30 = vsel %vm420_vm2, %v1141_v15, %v1146_v28 }
 0x355   :  { %2327 = vmatpush3.bf16.msra.mxu1 %v2326_v57  ;;  %1255 = vmatprep.mubr.f32.mxu1 %v1135_v47 }
 0x356   :  { %2329 = vmatprep.subr.bf16.mxu1 %v2328_v40 }
 0x357   :  { %2363 = vmatpush3.bf16.msra.mxu0 %v2919_v39 }
 0x358   :  { %2365 = vmatprep.subr.bf16.mxu0 %v2925_v43 }
 0x359   :  { %2331 = vmatpush3.bf16.msra.mxu1 %v2330_v52 }
 0x35a   :  { %2333 = vmatprep.subr.bf16.mxu1 %v2332_v53 }
 0x35b   :  { %2367 = vmatpush3.bf16.msra.mxu0 %v2925_v43 }
 0x35c   :  { %2369 = vmatprep.subr.bf16.mxu0 %v2934_v46 }
 0x35d   :  { %2335 = vmatpush3.bf16.msra.mxu1 %v2334_v62 }
 0x35e   :  { %2337 = vmatprep.subr.bf16.mxu1 %v2336_v63 }
 0x35f   :  { %2371 = vmatpush3.bf16.msra.mxu0 %v2934_v46 }
 0x360   :  { %2373 = vmatprep.subr.bf16.mxu0 %v2940_v49 }
 0x361   :  { %2339 = vmatpush3.bf16.msra.mxu1 %v2338_v5 }
 0x362   :  { %2341 = vmatprep.subr.bf16.mxu1 %v2340_v6 }
 0x363   :  { %2375 = vmatpush3.bf16.msra.mxu0 %v2940_v49 }
 0x365   :  { %2343 = vmatpush3.bf16.msra.mxu1 %v2342_v11 }
 0x366   :  { %2377 = vmatprep.subr.bf16.mxu1 %v2898_v27 }
 0x368   :  { %1256 = vmatmul.mubr.f32.vlgmr.msra.gmra.mrb[20].mxu1 %v1132_v18 }
 0x369   :  { %1260 = vmatprep.mubr.f32.mxu1 %v1139_v0  ;;  %2379 = vmatpush3.bf16.msra.mxu1 %v2898_v27  ;;  %v1142_v27 = vsel %vm420_vm2, %v1140_v24, %v1141_v15 }
 0x36a   :  { %2381 = vmatprep.subr.bf16.mxu1 %v2900_v29 }
 0x36c   :  { %1261 = vmatmul.mubr.f32.gmra.mrb[22].mxu1 %v1137_v41 }
 0x36d   :  { %1265 = vmatprep.mubr.f32.mxu1 %v1145_v22  ;;  %2383 = vmatpush3.bf16.msra.mxu1 %v2900_v29 }
 0x36e   :  { %2385 = vmatprep.subr.bf16.mxu1 %v2907_v32 }
 0x370   :  { %1266 = vmatmul.mubr.f32.gmra.mrb[24].mxu1 %v1142_v27 }
 0x371   :  { %1270 = vmatprep.mubr.f32.mxu1 %v1149_v26  ;;  %2387 = vmatpush3.bf16.msra.mxu1 %v2907_v32 }
 0x372   :  { %2389 = vmatprep.subr.bf16.mxu1 %v2913_v35 }
 0x374   :  { %1271 = vmatmul.mubr.f32.gmra.mrb[26].mxu1 %v1147_v30 }
 0x375   :  { %2391 = vmatpush3.bf16.msra.mxu1 %v2913_v35 }
 0x376   :  { %2393 = vmatprep.subr.bf16.mxu1 %v2919_v39 }
 0x379   :  { %2395 = vmatpush3.bf16.msra.mxu1 %v2919_v39 }
 0x37a   :  { %2397 = vmatprep.subr.bf16.mxu1 %v2925_v43 }
 0x37d   :  { %2399 = vmatpush3.bf16.msra.mxu1 %v2925_v43 }
 0x37e   :  { %2401 = vmatprep.subr.bf16.mxu1 %v2934_v46 }
 0x381   :  { %2403 = vmatpush3.bf16.msra.mxu1 %v2934_v46 }
 0x382   :  { %2405 = vmatprep.subr.bf16.mxu1 %v2940_v49 }
 0x385   :  { %2407 = vmatpush3.bf16.msra.mxu1 %v2940_v49 }
 0x417   :  { %v1840_v36 = vpop.f32.mrb[20].mxu0 }
 0x418   :  { %v1841_v29 = vpop.f32.mrb[21].mxu0 }
 0x419   :  { %v1842_v32 = vadd.f32 %v1841_v29, %v1840_v36 }
 0x41b   :  { %v1796_v35 = vpop.f32.mrb[12].mxu1  ;;  %v1843_v44 = vpop.f32.mrb[22].mxu0 }
 0x41c   :  { %v1797_v31 = vpop.f32.mrb[13].mxu1  ;;  %v1844_v39 = vpop.f32.mrb[23].mxu0 }
 0x41d   :  { %v1798_v33 = vadd.f32 %v1797_v31, %v1796_v35  ;;  %v1845_v34 = vadd.f32 %v1844_v39, %v1843_v44 }
 0x41f   :  { %v1096_v55 = vadd.f32 %v1842_v32, %v1798_v33  ;;  %v1799_v37 = vpop.f32.mrb[14].mxu1 }
 0x420   :  { %v1846_v43 = vpop.f32.mrb[24].mxu0  ;;  %v1800_v56 = vpop.f32.mrb[15].mxu1 }
 0x421   :  { %v1801_v38 = vadd.f32 %v1800_v56, %v1799_v37  ;;  %v1847_v57 = vpop.f32.mrb[25].mxu0 }
 0x422   :  { %v1848_v46 = vadd.f32 %v1847_v57, %v1846_v43 }
 0x423   :  { %v1101_v40 = vadd.f32 %v1845_v34, %v1801_v38  ;;  %v1802_v60 = vpop.f32.mrb[16].mxu1 }
 0x424   :  { %v1849_v45 = vpop.f32.mrb[26].mxu0  ;;  %v1803_v49 = vpop.f32.mrb[17].mxu1 }
 0x425   :  { %v1804_v47 = vadd.f32 %v1803_v49, %v1802_v60  ;;  %v1850_v48 = vpop.f32.mrb[27].mxu0 }
 0x426   :  { %v1851_v50 = vadd.f32 %v1850_v48, %v1849_v45  ;;  %v1590_v45 = vld [vmem:[%s3075_s6] ss:$0 sm:$0xff] }
 0x427   :  { %v1106_v51 = vadd.f32 %v1848_v46, %v1804_v47  ;;  %v1805_v52 = vpop.f32.mrb[18].mxu1 }
 0x428   :  { %v1806_v53 = vpop.f32.mrb[19].mxu1 }
 0x429   :  { %v1807_v54 = vadd.f32 %v1806_v53, %v1805_v52 }
 0x42b   :  { %v1111_v58 = vadd.f32 %v1851_v50, %v1807_v54 }
 0x43b   :  { %v1884_v59 = vpop.f32.mrb[20].mxu1 }
 0x43c   :  { %v1885_v61 = vpop.f32.mrb[21].mxu1 }
 0x43d   :  { %v1886_v62 = vadd.f32 %v1885_v61, %v1884_v59 }
 0x43f   :  { %v1276_v63 = vadd.f32 %v1886_v62, %v1096_v55  ;;  %v1887_v1 = vpop.f32.mrb[22].mxu1 }
 0x440   :  { %v1888_v2 = vpop.f32.mrb[23].mxu1 }
 0x441   :  { %v1889_v3 = vadd.f32 %v1888_v2, %v1887_v1  ;;  %2044 = vmatprep.mubr.f32.mxu0 %v1276_v63  ;;  %v2418_v1 = vld [vmem:[%s3069_s0] sm:$0xff] }
 0x443   :  { %v1277_v4 = vadd.f32 %v1889_v3, %v1101_v40  ;;  %v1890_v5 = vpop.f32.mrb[24].mxu1  ;;  %v2419_v3 = vld [vmem:[%s3069_s0 + $0x8] sm:$0xff] }
 0x444   :  { %v1891_v6 = vpop.f32.mrb[25].mxu1 }
 0x445   :  { %v1892_v7 = vadd.f32 %v1891_v6, %v1890_v5  ;;  %2045 = vmatmul.mubr.f32.vlgmr.msra.gmra.mrb[28].mxu0 %v1277_v4  ;;  %v2420_v5 = vld [vmem:[%s3069_s0 + $0x10] sm:$0xff] }
 0x447   :  { %v1278_v8 = vadd.f32 %v1892_v7, %v1106_v51  ;;  %v1893_v9 = vpop.f32.mrb[26].mxu1  ;;  %v1591_v51 = vld [vmem:[%s3076_s7] ss:$0 sm:$0xff]  ;;  %v2421_v7 = vld [vmem:[%s3069_s0 + $0x18] sm:$0xff] }
 0x448   :  { %v1894_v10 = vpop.f32.mrb[27].mxu1 }
 0x449   :  { %v1895_v11 = vadd.f32 %v1894_v10, %v1893_v9  ;;  %2047 = vmatprep.mubr.f32.mxu0 %v1278_v8 }
 0x44b   :  { %v1279_v12 = vadd.f32 %v1895_v11, %v1111_v58 }
 0x44d   :  { %2048 = vmatmul.mubr.f32.gmra.mrb[30].mxu0 %v1279_v12 }
 0x518   :  { %v2046_v13 = vpop.f32.mrb[28].mxu0 }
 0x519   :  { %v1346_v16 = vpop.f32.mrb[29].mxu0 }
 0x51a   :  { %v1365_v14 = vadd.f32 %v2046_v13, %v1346_v16 }
 0x520   :  { %v2049_v17 = vpop.f32.mrb[30].mxu0 }
 0x521   :  { %v1356_v0 = vpop.f32.mrb[31].mxu0 }
 0x522   :  { %v1366_v42 = vadd.f32 %v1365_v14, %v1356_v0 }
 0x524   :  { %v1367_v18 = vadd.f32 %v2049_v17, %v1366_v42 }
 0x526   :  { %v1368_v19 = vrot.slane %v1367_v18, 4 }
 0x528   :  { %v1369_v20 = vadd.f32 %v1368_v19, %v1367_v18 }
 0x52a   :  { %v1370_v21 = vrot.slane %v1369_v20, 2 }
 0x52c   :  { %v1371_v22 = vadd.f32 %v1370_v21, %v1369_v20 }
 0x52e   :  { %v1372_v23 = vrot.slane %v1371_v22, 1 }
 0x530   :  { %v1373_v41 = vadd.f32 %v1372_v23, %v1371_v22 }
 0x532   :  { %v1374_v24 = vmul.f32 0.001953125, %v1373_v41 }
 0x534   :  { %v1375_v25 = vsub.f32 %v1276_v63, %v1374_v24  ;;  %v1376_v15 = vsub.f32 %v1277_v4, %v1374_v24  ;;  %v1377_v26 = vsub.f32 %v1278_v8, %v1374_v24  ;;  %v1378_v30 = vsub.f32 %v1279_v12, %v1374_v24 }
 0x536   :  { %v1379_v27 = vmul.f32 %v1375_v25, %v1375_v25  ;;  %v1380_v28 = vmul.f32 %v1376_v15, %v1376_v15  ;;  %v1381_v36 = vmul.f32 %v1377_v26, %v1377_v26  ;;  %v1382_v29 = vmul.f32 %v1378_v30, %v1378_v30 }
 0x538   :  { %2082 = vmatprep.mubr.f32.mxu1 %v1379_v27 }
 0x539   :  { %2083 = vmatmul.mubr.f32.vlgmr.msra.gmra.mrb[28].mxu1 %v1380_v28 }
 0x53a   :  { %2085 = vmatprep.mubr.f32.mxu1 %v1381_v36 }
 0x53d   :  { %2086 = vmatmul.mubr.f32.gmra.mrb[30].mxu1 %v1382_v29 }
 0x60c   :  { %v2084_v32 = vpop.f32.mrb[28].mxu1 }
 0x60d   :  { %v1449_v35 = vpop.f32.mrb[29].mxu1 }
 0x60e   :  { %v1468_v44 = vadd.f32 %v2084_v32, %v1449_v35 }
 0x610   :  { %v2087_v31 = vpop.f32.mrb[30].mxu1 }
 0x611   :  { %v1459_v33 = vpop.f32.mrb[31].mxu1 }
 0x612   :  { %v1469_v39 = vadd.f32 %v1468_v44, %v1459_v33 }
 0x614   :  { %v1470_v34 = vadd.f32 %v2087_v31, %v1469_v39 }
 0x616   :  { %v1471_v55 = vrot.slane %v1470_v34, 4 }
 0x618   :  { %v1472_v37 = vadd.f32 %v1471_v55, %v1470_v34 }
 0x61a   :  { %v1473_v43 = vrot.slane %v1472_v37, 2 }
 0x61c   :  { %v1474_v56 = vadd.f32 %v1473_v43, %v1472_v37 }
 0x61e   :  { %v1475_v38 = vrot.slane %v1474_v56, 1 }
 0x620   :  { %v1476_v57 = vadd.f32 %v1475_v38, %v1474_v56 }
 0x622   :  { %v1477_v46 = vmul.f32 0.001953125, %v1476_v57 }
 0x624   :  { %v1478_v40 = vadd.f32 1e-05, %v1477_v46 }
 0x626   :  { %2415 = vrsqrt.f32 %v1478_v40 }
 0x630   :  { %v2416_v60 = vpop.eup %2415 }
 0x631   :  { %v1480_v49 = vmul.f32 %v2416_v60, %v1375_v25  ;;  %v1481_v47 = vmul.f32 %v2416_v60, %v1376_v15  ;;  %v1482_v48 = vmul.f32 %v2416_v60, %v1377_v26  ;;  %v1483_v50 = vmul.f32 %v2416_v60, %v1378_v30 }
 0x633   :  { %v1491_v52 = vmul.f32 %v1590_v45, %v1480_v49  ;;  %v1492_v53 = vmul.f32 %v1590_v45, %v1481_v47  ;;  %v1493_v54 = vmul.f32 %v1590_v45, %v1482_v48  ;;  %v1494_v58 = vmul.f32 %v1590_v45, %v1483_v50 }
 0x635   :  { %v1502_v59 = vadd.f32 %v1591_v51, %v1491_v52  ;;  %v1503_v61 = vadd.f32 %v1591_v51, %v1492_v53  ;;  %v1504_v62 = vadd.f32 %v1591_v51, %v1493_v54  ;;  %v1505_v63 = vadd.f32 %v1591_v51, %v1494_v58 }
 0x637   :  { %v1506_v2 = vadd.f32 %v2418_v1, %v1502_v59  ;;  %v1507_v4 = vadd.f32 %v2419_v3, %v1503_v61  ;;  %v1508_v6 = vadd.f32 %v2420_v5, %v1504_v62  ;;  %v1509_v8 = vadd.f32 %v2421_v7, %v1505_v63 }
 0x639   :  { %v1510_v9 = vmax.f32 %v1506_v2, 0.0  ;;  %v1511_v10 = vmax.f32 %v1507_v4, 0.0  ;;  %v1512_v11 = vmax.f32 %v1508_v6, 0.0  ;;  %v1513_v12 = vmax.f32 %v1509_v8, 0.0 }
 0x63b   :  { %1514 = vst [vmem:[%s3077_s8] sm:$0xff] %v1510_v9  ;;  %1515 = vst [vmem:[%s3077_s8 + $0x8] sm:$0xff] %v1511_v10 }
 0x63c   :  { %1516 = vst [vmem:[%s3077_s8 + $0x10] sm:$0xff] %v1512_v11  ;;  %1517 = vst [vmem:[%s3077_s8 + $0x18] sm:$0xff] %v1513_v12 }
 0x63d   :  { %1522 = vsyncpa [#allocation4], 1 }
 0x63e   :  { %1523 = vsyncpa [#allocation6], 1 }

</bundles_post_ra>
